<compile_context>
chip_gen: v7x
topology: tpu7x:2x2x1
jax: 0.10.0
libtpu: 0.0.40
codegen_flags: <defaults>
</compile_context>

<pallas_src>
import jax
import jax.numpy as jnp
from jax import lax
from jax.experimental import pallas as pl
from jax.experimental.pallas import tpu as pltpu

BN_EPS = 1e-5
H = W = 16
HW = H * W          # 256 flattened spatial positions per image
CIN = 3
C1, C2 = 8, 16      # conv1 / conv2 output channels
K1 = 32             # conv1 stacked contraction dim (27 real rows, padded to 32)
K2 = 9 * C1         # conv2 stacked contraction dim (72)


# ------------------------------ fused Pallas kernel ------------------------------

def _fused_block_kernel(xs_ref, w1_ref, w2_ref, pvec_ref, mask_ref, o_ref, k2_ref):
    # xs_ref  : (32, ncols)  wrapper-built conv1 im2col stack (row k*3+ci), rows 27..31 zero
    # w1_ref  : (8, 32)      conv1 weights [co, k*3+ci], zero-padded cols 27..31
    # w2_ref  : (16, 72)     conv2 weights [co, k*8+ci]
    # pvec_ref: (16, 4)      columns = [b1 (padded), b2, gamma, beta]
    # mask_ref: (16, ncols)  1.0 at pooled-output columns (even h<12, even w<12), else 0.0
    # o_ref   : (16, ncols)  normalized slab (garbage at non-masked columns; wrapper slices)
    # k2_ref  : (72, ncols)  VMEM scratch: conv2 k-stacked operand (fully overwritten)
    ncols = o_ref.shape[1]
    inv_count = 1.0 / float((ncols // HW) * 36)     # N * 6 * 6 pooled positions / channel

    # ---- conv1 + bias + relu: ONE MXU dot ----------------------------------------
    acc1 = jnp.dot(w1_ref[...], xs_ref[...],
                   preferred_element_type=jnp.float32,
                   precision=lax.Precision.HIGHEST)
    y1 = jnp.maximum(acc1 + pvec_ref[0:C1, 0:1], 0.0)          # (8, ncols), valid h,w <= 13

    # ---- build conv2's k-stacked operand via circular lane rolls (XLU) -----------
    # chunk k holds y1 shifted left by off = kh*W + kw (roll by ncols-off == roll by -off);
    # wrapped columns only land at positions never consumed by a valid pooled/BN output.
    for kh in range(3):
        for kw in range(3):
            k = kh * 3 + kw
            off = kh * W + kw
            chunk = y1 if off == 0 else pltpu.roll(y1, ncols - off, axis=1)
            k2_ref[k * C1:(k + 1) * C1, :] = chunk              # aligned 8-row stores

    # ---- conv2 + bias + relu: ONE MXU dot ----------------------------------------
    acc2 = jnp.dot(w2_ref[...], k2_ref[...],
                   preferred_element_type=jnp.float32,
                   precision=lax.Precision.HIGHEST)
    y2 = jnp.maximum(acc2 + pvec_ref[0:C2, 1:2], 0.0)           # (16, ncols), valid h,w <= 11

    # ---- 2x2 max-pool via 3 in-register lane rolls --------------------------------
    # p at column n*256 + 2hp*16 + 2wp = max(y2[c], y2[c+1], y2[c+16], y2[c+17]).
    p = jnp.maximum(
        jnp.maximum(y2, pltpu.roll(y2, ncols - 1, axis=1)),
        jnp.maximum(pltpu.roll(y2, ncols - W, axis=1),
                    pltpu.roll(y2, ncols - (W + 1), axis=1)))

    # ---- BatchNorm (training-mode batch statistics), mask precomputed in wrapper --
    pm = p * mask_ref[...]
    s = jnp.sum(pm, axis=1, keepdims=True)                      # (16, 1)
    ss = jnp.sum(pm * p, axis=1, keepdims=True)                 # (16, 1) sum of p^2 on valid
    mean = s * inv_count
    var = ss * inv_count - mean * mean                          # biased variance (PyTorch BN)
    inv = lax.rsqrt(var + BN_EPS)
    gamma = pvec_ref[0:C2, 2:3]
    beta = pvec_ref[0:C2, 3:4]
    o_ref[...] = (p - mean) * (inv * gamma) + beta
    # TODO(synk): BatchNorm running_mean / running_var buffer updates (training-time
    # stateful side effect) are not produced; only the normalized forward output is.


# ------------------------------------ wrapper ------------------------------------

def conv_block_forward(x_nchw, params):
    w1, b1, w2, b2, gamma, beta = params
    N = x_nchw.shape[0]
    ncols = N * HW

    # Tiny one-time layout prep (a few KB of XLA glue).
    # conv1 im2col stack: row k*3 + ci = x[ci] shifted by off_k = kh*W + kw.
    x_flat = jnp.transpose(x_nchw, (1, 0, 2, 3)).reshape(CIN, ncols)
    x_wide = jnp.pad(x_flat, ((0, 0), (0, 2 * W + 2)))
    taps = [x_wide[:, kh * W + kw: kh * W + kw + ncols]
            for kh in range(3) for kw in range(3)]
    xstack = jnp.pad(jnp.concatenate(taps, axis=0),
                     ((0, K1 - 9 * CIN), (0, 0)))                              # (32, ncols)

    # Weight matrices [co, k*Cin + ci], k = kh*3 + kw  (OIHW -> O, kh, kw, I).
    w1_mat = jnp.pad(jnp.transpose(w1, (0, 2, 3, 1)).reshape(C1, 9 * CIN),
                     ((0, 0), (0, K1 - 9 * CIN)))                              # (8, 32)
    w2_mat = jnp.transpose(w2, (0, 2, 3, 1)).reshape(C2, K2)                   # (16, 72)

    # Pack the four small per-channel vectors into one operand -> one DMA.
    pvec = jnp.stack([jnp.pad(b1, (0, C2 - C1)), b2, gamma, beta], axis=1)     # (16, 4)

    # Static BN validity mask: 1.0 at columns n*256 + 2hp*16 + 2wp, hp, wp < 6.
    hh = jnp.arange(HW) // W
    ww = jnp.arange(HW) % W
    valid = ((hh < 12) & (ww < 12) & (hh % 2 == 0) & (ww % 2 == 0)).astype(jnp.float32)
    mask = jnp.broadcast_to(jnp.tile(valid, N), (C2, ncols))                   # (16, ncols)

    cost = pl.CostEstimate(
        flops=2 * (K1 * C1 + K2 * C2) * ncols,
        transcendentals=C2,
        bytes_accessed=4 * (K1 * ncols + C1 * K1 + C2 * K2 + C2 * 4 + 2 * C2 * ncols),
    )

    norm = pl.pallas_call(
        _fused_block_kernel,
        out_shape=jax.ShapeDtypeStruct((C2, ncols), jnp.float32),
        grid=(1,),
        in_specs=[
            pl.BlockSpec((K1, ncols), lambda i: (0, 0)),
            pl.BlockSpec((C1, K1), lambda i: (0, 0)),
            pl.BlockSpec((C2, K2), lambda i: (0, 0)),
            pl.BlockSpec((C2, 4), lambda i: (0, 0)),
            pl.BlockSpec((C2, ncols), lambda i: (0, 0)),
        ],
        out_specs=pl.BlockSpec((C2, ncols), lambda i: (0, 0)),
        scratch_shapes=[pltpu.VMEM((K2, ncols), jnp.float32)],
        compiler_params=pltpu.CompilerParams(dimension_semantics=("arbitrary",)),
        cost_estimate=cost,
    )(xstack, w1_mat, w2_mat, pvec, mask)

    # Final tiny strided gather back to NCHW (N, 16, 6, 6).
    out = norm.reshape(C2, N, H, W)[:, :, 0:12:2, 0:12:2]
    return jnp.transpose(out, (1, 0, 2, 3))


# ------------------------------- pure-JAX reference -------------------------------

def reference_forward(x_nchw, params):
    w1, b1, w2, b2, gamma, beta = params
    dn = ("NCHW", "OIHW", "NCHW")
    y = lax.conv_general_dilated(x_nchw, w1, (1, 1), "VALID", dimension_numbers=dn,
                                 precision=lax.Precision.HIGHEST)
    y = jnp.maximum(y + b1[None, :, None, None], 0.0)
    y = lax.conv_general_dilated(y, w2, (1, 1), "VALID", dimension_numbers=dn,
                                 precision=lax.Precision.HIGHEST)
    y = jnp.maximum(y + b2[None, :, None, None], 0.0)
    y = lax.reduce_window(y, -jnp.inf, lax.max, (1, 1, 2, 2), (1, 1, 2, 2), "VALID")
    mean = y.mean(axis=(0, 2, 3))
    var = y.var(axis=(0, 2, 3))
    inv = lax.rsqrt(var + BN_EPS)
    return ((y - mean[None, :, None, None]) * inv[None, :, None, None]
            * gamma[None, :, None, None] + beta[None, :, None, None])


# ----------------------------------------- main -----------------------------------------

if __name__ == "__main__":
    key = jax.random.PRNGKey(0)
    kx, k1, k2, k3, k4, k5, k6 = jax.random.split(key, 7)

    N = 2
    x = jax.random.normal(kx, (N, CIN, H, W), jnp.float32)

    # Deterministic synthetic parameters (shapes match nn.Conv2d / nn.BatchNorm2d)
    w1 = jax.random.normal(k1, (C1, CIN, 3, 3), jnp.float32) * 0.2
    b1 = jax.random.normal(k2, (C1,), jnp.float32) * 0.1
    w2 = jax.random.normal(k3, (C2, C1, 3, 3), jnp.float32) * 0.1
    b2 = jax.random.normal(k4, (C2,), jnp.float32) * 0.1
    gamma = 1.0 + 0.1 * jax.random.normal(k5, (C2,), jnp.float32)
    beta = 0.1 * jax.random.normal(k6, (C2,), jnp.float32)
    params = (w1, b1, w2, b2, gamma, beta)

    out = jax.block_until_ready(conv_block_forward(x, params))
    ref = jax.block_until_ready(reference_forward(x, params))

    assert out.shape == (N, C2, 6, 6), out.shape
    max_err = float(jnp.max(jnp.abs(out - ref)))
    assert max_err < 1e-4, f"mismatch vs reference: {max_err}"

    print("KERNEL_OK")
</pallas_src>

<mosaic_0001>
module attributes {stable_mosaic.version = 11 : i64} {
  func.func @_fused_block_kernel(%arg0: i32, %arg1: memref<32x512xf32, #tpu.memory_space<vmem>>, %arg2: memref<8x32xf32, #tpu.memory_space<vmem>>, %arg3: memref<16x72xf32, #tpu.memory_space<vmem>>, %arg4: memref<16x4xf32, #tpu.memory_space<vmem>>, %arg5: memref<16x512xf32, #tpu.memory_space<vmem>>, %arg6: memref<16x512xf32, #tpu.memory_space<vmem>>, %arg7: memref<72x512xf32, #tpu.memory_space<vmem>>) attributes {dimension_semantics = [#tpu.dimension_semantics<arbitrary>], iteration_bounds = array<i64: 1>, scalar_prefetch = 0 : i64, scratch_operands = 1 : i64, tpu.core_type = #tpu.core_type<tc>, window_params = [{pipeline_mode = #tpu.pipeline_mode<synchronous>, transform_indices = @transform_0, window_bounds = array<i64: 32, 512>}, {pipeline_mode = #tpu.pipeline_mode<synchronous>, transform_indices = @transform_1, window_bounds = array<i64: 8, 32>}, {pipeline_mode = #tpu.pipeline_mode<synchronous>, transform_indices = @transform_2, window_bounds = array<i64: 16, 72>}, {pipeline_mode = #tpu.pipeline_mode<synchronous>, transform_indices = @transform_3, window_bounds = array<i64: 16, 4>}, {pipeline_mode = #tpu.pipeline_mode<synchronous>, transform_indices = @transform_4, window_bounds = array<i64: 16, 512>}, {pipeline_mode = #tpu.pipeline_mode<synchronous>, transform_indices = @transform_5, window_bounds = array<i64: 16, 512>}]} {
    %c0 = arith.constant 0 : index
    %c0_0 = arith.constant 0 : index
    %0 = vector.load %arg2[%c0, %c0_0] : memref<8x32xf32, #tpu.memory_space<vmem>>, vector<8x32xf32>
    %c0_1 = arith.constant 0 : index
    %c0_2 = arith.constant 0 : index
    %1 = vector.load %arg1[%c0_1, %c0_2] : memref<32x512xf32, #tpu.memory_space<vmem>>, vector<32x512xf32>
    %cst = arith.constant dense<0.000000e+00> : vector<8x512xf32>
    %2 = tpu.matmul %0, %1, %cst {dimension_numbers = #tpu.dot_dimension_numbers<[1], [0], [0], [1], [0, 0, 1, 1], [], []>, precision = #tpu.contract_precision<fp32>} : vector<8x32xf32>, vector<32x512xf32>, vector<8x512xf32> -> vector<8x512xf32>
    %c0_3 = arith.constant 0 : index
    %c0_4 = arith.constant 0 : index
    %3 = vector.load %arg4[%c0_3, %c0_4] : memref<16x4xf32, #tpu.memory_space<vmem>>, vector<8x1xf32>
    %4 = vector.broadcast %3 : vector<8x1xf32> to vector<8x512xf32>
    %5 = arith.addf %2, %4 : vector<8x512xf32>
    %cst_5 = arith.constant 0.000000e+00 : f32
    %6 = vector.broadcast %cst_5 : f32 to vector<8x512xf32>
    %7 = arith.maximumf %5, %6 : vector<8x512xf32>
    %c0_6 = arith.constant 0 : index
    %c0_7 = arith.constant 0 : index
    %8 = vector.load %arg7[%c0_6, %c0_7] : memref<72x512xf32, #tpu.memory_space<vmem>>, vector<8x512xf32>
    tpu.vector_store %arg7[%c0_6, %c0_7], %7 {strides = array<i32>} : memref<72x512xf32, #tpu.memory_space<vmem>>, vector<8x512xf32>,
    %c511_i32 = arith.constant 511 : i32
    %9 = tpu.dynamic_rotate %7 by %c511_i32 dim 1 : vector<8x512xf32>, i32 -> vector<8x512xf32>
    %c8 = arith.constant 8 : index
    %c0_8 = arith.constant 0 : index
    %10 = vector.load %arg7[%c8, %c0_8] : memref<72x512xf32, #tpu.memory_space<vmem>>, vector<8x512xf32>
    tpu.vector_store %arg7[%c8, %c0_8], %9 {strides = array<i32>} : memref<72x512xf32, #tpu.memory_space<vmem>>, vector<8x512xf32>,
    %c510_i32 = arith.constant 510 : i32
    %11 = tpu.dynamic_rotate %7 by %c510_i32 dim 1 : vector<8x512xf32>, i32 -> vector<8x512xf32>
    %c16 = arith.constant 16 : index
    %c0_9 = arith.constant 0 : index
    %12 = vector.load %arg7[%c16, %c0_9] : memref<72x512xf32, #tpu.memory_space<vmem>>, vector<8x512xf32>
    tpu.vector_store %arg7[%c16, %c0_9], %11 {strides = array<i32>} : memref<72x512xf32, #tpu.memory_space<vmem>>, vector<8x512xf32>,
    %c496_i32 = arith.constant 496 : i32
    %13 = tpu.dynamic_rotate %7 by %c496_i32 dim 1 : vector<8x512xf32>, i32 -> vector<8x512xf32>
    %c24 = arith.constant 24 : index
    %c0_10 = arith.constant 0 : index
    %14 = vector.load %arg7[%c24, %c0_10] : memref<72x512xf32, #tpu.memory_space<vmem>>, vector<8x512xf32>
    tpu.vector_store %arg7[%c24, %c0_10], %13 {strides = array<i32>} : memref<72x512xf32, #tpu.memory_space<vmem>>, vector<8x512xf32>,
    %c495_i32 = arith.constant 495 : i32
    %15 = tpu.dynamic_rotate %7 by %c495_i32 dim 1 : vector<8x512xf32>, i32 -> vector<8x512xf32>
    %c32 = arith.constant 32 : index
    %c0_11 = arith.constant 0 : index
    %16 = vector.load %arg7[%c32, %c0_11] : memref<72x512xf32, #tpu.memory_space<vmem>>, vector<8x512xf32>
    tpu.vector_store %arg7[%c32, %c0_11], %15 {strides = array<i32>} : memref<72x512xf32, #tpu.memory_space<vmem>>, vector<8x512xf32>,
    %c494_i32 = arith.constant 494 : i32
    %17 = tpu.dynamic_rotate %7 by %c494_i32 dim 1 : vector<8x512xf32>, i32 -> vector<8x512xf32>
    %c40 = arith.constant 40 : index
    %c0_12 = arith.constant 0 : index
    %18 = vector.load %arg7[%c40, %c0_12] : memref<72x512xf32, #tpu.memory_space<vmem>>, vector<8x512xf32>
    tpu.vector_store %arg7[%c40, %c0_12], %17 {strides = array<i32>} : memref<72x512xf32, #tpu.memory_space<vmem>>, vector<8x512xf32>,
    %c480_i32 = arith.constant 480 : i32
    %19 = tpu.dynamic_rotate %7 by %c480_i32 dim 1 : vector<8x512xf32>, i32 -> vector<8x512xf32>
    %c48 = arith.constant 48 : index
    %c0_13 = arith.constant 0 : index
    %20 = vector.load %arg7[%c48, %c0_13] : memref<72x512xf32, #tpu.memory_space<vmem>>, vector<8x512xf32>
    tpu.vector_store %arg7[%c48, %c0_13], %19 {strides = array<i32>} : memref<72x512xf32, #tpu.memory_space<vmem>>, vector<8x512xf32>,
    %c479_i32 = arith.constant 479 : i32
    %21 = tpu.dynamic_rotate %7 by %c479_i32 dim 1 : vector<8x512xf32>, i32 -> vector<8x512xf32>
    %c56 = arith.constant 56 : index
    %c0_14 = arith.constant 0 : index
    %22 = vector.load %arg7[%c56, %c0_14] : memref<72x512xf32, #tpu.memory_space<vmem>>, vector<8x512xf32>
    tpu.vector_store %arg7[%c56, %c0_14], %21 {strides = array<i32>} : memref<72x512xf32, #tpu.memory_space<vmem>>, vector<8x512xf32>,
    %c478_i32 = arith.constant 478 : i32
    %23 = tpu.dynamic_rotate %7 by %c478_i32 dim 1 : vector<8x512xf32>, i32 -> vector<8x512xf32>
    %c64 = arith.constant 64 : index
    %c0_15 = arith.constant 0 : index
    %24 = vector.load %arg7[%c64, %c0_15] : memref<72x512xf32, #tpu.memory_space<vmem>>, vector<8x512xf32>
    tpu.vector_store %arg7[%c64, %c0_15], %23 {strides = array<i32>} : memref<72x512xf32, #tpu.memory_space<vmem>>, vector<8x512xf32>,
    %c0_16 = arith.constant 0 : index
    %c0_17 = arith.constant 0 : index
    %25 = vector.load %arg3[%c0_16, %c0_17] : memref<16x72xf32, #tpu.memory_space<vmem>>, vector<16x72xf32>
    %c0_18 = arith.constant 0 : index
    %c0_19 = arith.constant 0 : index
    %26 = vector.load %arg7[%c0_18, %c0_19] : memref<72x512xf32, #tpu.memory_space<vmem>>, vector<72x512xf32>
    %cst_20 = arith.constant dense<0.000000e+00> : vector<16x512xf32>
    %27 = tpu.matmul %25, %26, %cst_20 {dimension_numbers = #tpu.dot_dimension_numbers<[1], [0], [0], [1], [0, 0, 1, 1], [], []>, precision = #tpu.contract_precision<fp32>} : vector<16x72xf32>, vector<72x512xf32>, vector<16x512xf32> -> vector<16x512xf32>
    %c0_21 = arith.constant 0 : index
    %c1 = arith.constant 1 : index
    %28 = vector.load %arg4[%c0_21, %c1] : memref<16x4xf32, #tpu.memory_space<vmem>>, vector<16x1xf32>
    %29 = vector.broadcast %28 : vector<16x1xf32> to vector<16x512xf32>
    %30 = arith.addf %27, %29 : vector<16x512xf32>
    %cst_22 = arith.constant 0.000000e+00 : f32
    %31 = vector.broadcast %cst_22 : f32 to vector<16x512xf32>
    %32 = arith.maximumf %30, %31 : vector<16x512xf32>
    %c511_i32_23 = arith.constant 511 : i32
    %33 = tpu.dynamic_rotate %32 by %c511_i32_23 dim 1 : vector<16x512xf32>, i32 -> vector<16x512xf32>
    %34 = arith.maximumf %32, %33 : vector<16x512xf32>
    %c496_i32_24 = arith.constant 496 : i32
    %35 = tpu.dynamic_rotate %32 by %c496_i32_24 dim 1 : vector<16x512xf32>, i32 -> vector<16x512xf32>
    %c495_i32_25 = arith.constant 495 : i32
    %36 = tpu.dynamic_rotate %32 by %c495_i32_25 dim 1 : vector<16x512xf32>, i32 -> vector<16x512xf32>
    %37 = arith.maximumf %35, %36 : vector<16x512xf32>
    %38 = arith.maximumf %34, %37 : vector<16x512xf32>
    %c0_26 = arith.constant 0 : index
    %c0_27 = arith.constant 0 : index
    %39 = vector.load %arg5[%c0_26, %c0_27] : memref<16x512xf32, #tpu.memory_space<vmem>>, vector<16x512xf32>
    %40 = arith.mulf %38, %39 : vector<16x512xf32>
    %cst_28 = arith.constant dense<0.000000e+00> : vector<16xf32>
    %41 = vector.multi_reduction <add>, %40, %cst_28 [1] : vector<16x512xf32> to vector<16xf32>
    %42 = vector.shape_cast %41 : vector<16xf32> to vector<16x1xf32>
    %43 = arith.mulf %40, %38 : vector<16x512xf32>
    %cst_29 = arith.constant dense<0.000000e+00> : vector<16xf32>
    %44 = vector.multi_reduction <add>, %43, %cst_29 [1] : vector<16x512xf32> to vector<16xf32>
    %45 = vector.shape_cast %44 : vector<16xf32> to vector<16x1xf32>
    %cst_30 = arith.constant 0.013888889 : f32
    %46 = vector.broadcast %cst_30 : f32 to vector<16x1xf32>
    %47 = arith.mulf %42, %46 : vector<16x1xf32>
    %cst_31 = arith.constant 0.013888889 : f32
    %48 = vector.broadcast %cst_31 : f32 to vector<16x1xf32>
    %49 = arith.mulf %45, %48 : vector<16x1xf32>
    %50 = arith.mulf %47, %47 : vector<16x1xf32>
    %51 = arith.subf %49, %50 : vector<16x1xf32>
    %cst_32 = arith.constant 9.99999974E-6 : f32
    %52 = vector.broadcast %cst_32 : f32 to vector<16x1xf32>
    %53 = arith.addf %51, %52 : vector<16x1xf32>
    %54 = math.rsqrt %53 : vector<16x1xf32>
    %c0_33 = arith.constant 0 : index
    %c2 = arith.constant 2 : index
    %55 = vector.load %arg4[%c0_33, %c2] : memref<16x4xf32, #tpu.memory_space<vmem>>, vector<16x1xf32>
    %c0_34 = arith.constant 0 : index
    %c3 = arith.constant 3 : index
    %56 = vector.load %arg4[%c0_34, %c3] : memref<16x4xf32, #tpu.memory_space<vmem>>, vector<16x1xf32>
    %57 = vector.broadcast %47 : vector<16x1xf32> to vector<16x512xf32>
    %58 = arith.subf %38, %57 : vector<16x512xf32>
    %59 = arith.mulf %54, %55 : vector<16x1xf32>
    %60 = vector.broadcast %59 : vector<16x1xf32> to vector<16x512xf32>
    %61 = arith.mulf %58, %60 : vector<16x512xf32>
    %62 = vector.broadcast %56 : vector<16x1xf32> to vector<16x512xf32>
    %63 = arith.addf %61, %62 : vector<16x512xf32>
    %c0_35 = arith.constant 0 : index
    %c0_36 = arith.constant 0 : index
    %64 = vector.load %arg6[%c0_35, %c0_36] : memref<16x512xf32, #tpu.memory_space<vmem>>, vector<16x512xf32>
    tpu.vector_store %arg6[%c0_35, %c0_36], %63 {strides = array<i32>} : memref<16x512xf32, #tpu.memory_space<vmem>>, vector<16x512xf32>,
    return
  }
  func.func @transform_0(%arg0: i32) -> (i32, i32) {
    %c0_i32 = arith.constant 0 : i32
    %c0_i32_0 = arith.constant 0 : i32
    %c0_i32_1 = arith.constant 0 : i32
    return %c0_i32, %c0_i32_0 : i32, i32
  }
  func.func @transform_1(%arg0: i32) -> (i32, i32) {
    %c0_i32 = arith.constant 0 : i32
    %c0_i32_0 = arith.constant 0 : i32
    %c0_i32_1 = arith.constant 0 : i32
    return %c0_i32, %c0_i32_0 : i32, i32
  }
  func.func @transform_2(%arg0: i32) -> (i32, i32) {
    %c0_i32 = arith.constant 0 : i32
    %c0_i32_0 = arith.constant 0 : i32
    %c0_i32_1 = arith.constant 0 : i32
    return %c0_i32, %c0_i32_0 : i32, i32
  }
  func.func @transform_3(%arg0: i32) -> (i32, i32) {
    %c0_i32 = arith.constant 0 : i32
    %c0_i32_0 = arith.constant 0 : i32
    %c0_i32_1 = arith.constant 0 : i32
    return %c0_i32, %c0_i32_0 : i32, i32
  }
  func.func @transform_4(%arg0: i32) -> (i32, i32) {
    %c0_i32 = arith.constant 0 : i32
    %c0_i32_0 = arith.constant 0 : i32
    %c0_i32_1 = arith.constant 0 : i32
    return %c0_i32, %c0_i32_0 : i32, i32
  }
  func.func @transform_5(%arg0: i32) -> (i32, i32) {
    %c0_i32 = arith.constant 0 : i32
    %c0_i32_0 = arith.constant 0 : i32
    %c0_i32_1 = arith.constant 0 : i32
    return %c0_i32, %c0_i32_0 : i32, i32
  }
}

</mosaic_0001>

<bundles_post_ra>
// kernel: tpu_custom_call.1
= control target key start
LH: loop header
LB: loop body
LE: loop exit
PB: predicated region body
PF: predicated region fallthrough
CT: control target
= control target key end

     0   :  { %10 = vsyncpa [#allocation4], 0  ;;  %s4797_s0 = inlined_call_operand.hbm [shape: f32[32,512], index: 0, kind: input, shape index: {}]   ;;  %s4798_s1 = inlined_call_operand.vmem [shape: f32[8,32], index: 1, kind: input, shape index: {}]   ;;  %s4799_s2 = inlined_call_operand.vmem [shape: f32[16,72], index: 2, kind: input, shape index: {}]   ;;  %s4800_s3 = inlined_call_operand.vmem [shape: f32[16,4], index: 3, kind: input, shape index: {}]   ;;  %s4801_s4 = inlined_call_operand.hbm [shape: f32[16,512], index: 4, kind: input, shape index: {}]   ;;  %s4802_s5 = inlined_call_operand.hbm [shape: f32[16,512], index: 5, kind: output, shape index: {}]  }
   0x1   :  { %11 = vsyncpa [#allocation7], 0 }
   0x2   :  { %12 = vsyncpa [#allocation5], 0  ;;  %s3500_s18 = smov [#allocation3]   ;;  %s3428_s22 = scalar_lea.hbm %s4797_s0, 2048 }
   0x3   :  { %s18_s19 = sshll.u32 %s3500_s18, 4  ;;  %p3429_p0 = scmp.ne.s32.totalorder %s4797_s0, %s3428_s22  ;;  %s19_s19 = int_to_ptr.vmem [resolvable:$true] %s18_s19 }
   0x4   :  { %p3432_p1 = scmp.lt.u32.totalorder %s3428_s22, %s4797_s0 }
   0x6   :  { %p3434_p2 = pnand %p3432_p1, %p3429_p0 }
   0x8   :  { %3437 = shalt.err (!%p3434_p2)
}
   0x9   :  { %s3438_s27 = scalar_lea.vmem %s19_s19, 2048  ;;  %p3443_p4 = scmp.lt.s32.totalorder %s19_s19, %s19_s19 }
   0xa   :  { %p3439_p3 = scmp.ne.s32.totalorder %s19_s19, %s3438_s27  ;;  %p3444_p5 = scmp.lt.s32.totalorder %s3438_s27, %s3438_s27 }
   0xc   :  { %p3445_p6 = por %p3444_p5, %p3443_p4 }
   0xe   :  { %p3446_p7 = pnand %p3445_p6, %p3439_p3 }
  0x10   :  { %3449 = shalt.err (!%p3446_p7)
}
  0x11   :  { %s3501_s28 = smov 512   ;;  %s3502_s29 = smov 32  }
  0x12   :  { %24 = dma.hbm_to_vmem [thread:$0]  %s4797_s0, 2048, %s19_s19, [#allocation4], %s3501_s28, %s3501_s28, %s3502_s29  }
  0x13   :  { %s3503_s7 = smov [#allocation6]   ;;  %s3450_s11 = scalar_lea.hbm %s4801_s4, 1024 }
  0x14   :  { %s36_s8 = sshll.u32 %s3503_s7, 4  ;;  %p3451_p8 = scmp.ne.s32.totalorder %s4801_s4, %s3450_s11  ;;  %s37_s8 = int_to_ptr.vmem [resolvable:$true] %s36_s8 }
  0x15   :  { %p3454_p9 = scmp.lt.u32.totalorder %s3450_s11, %s4801_s4 }
  0x17   :  { %p3456_p10 = pnand %p3454_p9, %p3451_p8 }
  0x19   :  { %3459 = shalt.err (!%p3456_p10)
}
  0x1a   :  { %s3460_s16 = scalar_lea.vmem %s37_s8, 1024  ;;  %p3465_p12 = scmp.lt.s32.totalorder %s37_s8, %s37_s8 }
  0x1b   :  { %p3461_p11 = scmp.ne.s32.totalorder %s37_s8, %s3460_s16  ;;  %p3466_p13 = scmp.lt.s32.totalorder %s3460_s16, %s3460_s16 }
  0x1d   :  { %p3467_p0 = por %p3466_p13, %p3465_p12 }
  0x1f   :  { %p3468_p1 = pnand %p3467_p0, %p3461_p11 }
  0x21   :  { %3471 = shalt.err (!%p3468_p1)
}
  0x22   :  { %42 = dma.hbm_to_vmem [thread:$0]  %s4801_s4, 1024, %s37_s8, [#allocation7], %s3501_s28, %s3501_s28, %s3502_s29  }
  0x23   :  { %3494 = dma.done.wait [#allocation4], 2048  }
  0x24   :  { %3495 = vsyncadd [#allocation4], 4294965248 }
  0x25   :  { %3496 = dma.done.wait [#allocation7], 1024  }
  0x26   :  { %3497 = vsyncadd [#allocation7], 4294966272  ;;  %v4808_v0 = vmov 0.0   ;;  %v3505_v1 = vmov 0   ;;  %v51_v2 = vld [vmem:[#allocation3 + $0x8] sm:$0xff]  ;;  %v53_v4 = vld [vmem:[#allocation3 + $0x18] sm:$0xff] }
  0x27   :  { %148 = vmatprep.mubr.f32.mxu0 %v4808_v0  ;;  %691 = vmatprep.mubr.f32.mxu1 %v4808_v0  ;;  %v55_v3 = vld [vmem:[#allocation3 + $0x28] sm:$0xff]  ;;  %vm72_vm0 = vcmask 261120   ;;  %v76_v5 = vand.u32 4294901760, %v51_v2  ;;  %v57_v7 = vld [vmem:[#allocation3 + $0x38] sm:$0xff]  ;;  %v619_v8 = vand.u32 4294901760, %v53_v4  ;;  %v50_v9 = vld [vmem:[#allocation3] sm:$0xff] }
  0x28   :  { %3417 = vset.pattern.permute.xlu0 %v3505_v1  ;;  %v80_v6 = vand.u32 4294901760, %v55_v3  ;;  %v54_v10 = vld [vmem:[#allocation3 + $0x20] sm:$0xff]  ;;  %v623_v11 = vand.u32 4294901760, %v57_v7  ;;  %v78_v12 = vand.u32 4294901760, %v50_v9  ;;  %v52_v14 = vld [vmem:[#allocation3 + $0x10] sm:$0xff]  ;;  %v59_v16 = vld [vmem:[#allocation3 + $0x48] sm:$0xff] }
  0x29   :  { %v82_v13 = vand.u32 4294901760, %v54_v10  ;;  %v56_v15 = vld [vmem:[#allocation3 + $0x30] sm:$0xff]  ;;  %v3582_v18 = vsub.f32 %v51_v2, %v76_v5  ;;  %v3586_v20 = vsub.f32 %v53_v4, %v619_v8  ;;  %v63_v21 = vld [vmem:[#allocation3 + $0x68] sm:$0xff]  ;;  %v61_v22 = vld [vmem:[#allocation3 + $0x58] sm:$0xff]  ;;  %v621_v30 = vand.u32 4294901760, %v52_v14  ;;  %s3507_s21 = smov 127  }
  0x2a   :  { %v3580_v17 = vpack.c.bf16 %v80_v6, %v76_v5  ;;  %v3584_v19 = vsub.f32 %v55_v3, %v80_v6  ;;  %v65_v23 = vld [vmem:[#allocation3 + $0x78] sm:$0xff]  ;;  %v3588_v24 = vpack.c.bf16 %v623_v11, %v619_v8  ;;  %v3590_v25 = vsub.f32 %v57_v7, %v623_v11  ;;  %v58_v28 = vld [vmem:[#allocation3 + $0x40] sm:$0xff]  ;;  %v60_v39 = vld [vmem:[#allocation3 + $0x50] sm:$0xff]  ;;  %s3508_s22 = smov 112   ;;  %s3509_s23 = smov 111  }
  0x2b   :  { %v3592_v26 = vpack.c.bf16 %v82_v13, %v78_v12  ;;  %v3594_v27 = vsub.f32 %v50_v9, %v78_v12  ;;  %v3597_v29 = vsub.f32 %v54_v10, %v82_v13  ;;  %v625_v31 = vand.u32 4294901760, %v56_v15  ;;  %v66_v33 = vld [vmem:[%s4800_s3] sm:$0xff]  ;;  %v64_v44 = vld [vmem:[#allocation3 + $0x70] sm:$0xff]  ;;  %s3510_s24 = smov 110   ;;  %s3511_s25 = smov 96  }
  0x2c   :  { %3040 = vmatprep.subr.bf16.mxu0 %v3580_v17  ;;  %v84_v32 = vand.u32 4294901760, %v59_v16  ;;  %3088 = vmatprep.subr.bf16.mxu1 %v3588_v24  ;;  %v88_v34 = vand.u32 4294901760, %v63_v21  ;;  %v627_v35 = vand.u32 4294901760, %v61_v22  ;;  %v631_v36 = vand.u32 4294901760, %v65_v23  ;;  %v62_v37 = vld [vmem:[#allocation3 + $0x60] sm:$0xff]  ;;  %s3512_s26 = smov 95  }
  0x2d   :  { %3042 = vmatpush1.bf16.msra.mxu0 %v3592_v26  ;;  %v86_v38 = vand.u32 4294901760, %v58_v28  ;;  %v3604_v40 = vpack.c.bf16 %v625_v31, %v621_v30  ;;  %v3606_v41 = vsub.f32 %v52_v14, %v621_v30  ;;  %v3608_v42 = vsub.f32 %v56_v15, %v625_v31  ;;  %v49_v45 = vld [vmem:[%s4798_s1] sm:$0xff]  ;;  %69 = vperm.xlu0 %3417, %v66_v33   ;;  %s3506_s1 = smov 126   ;;  %s3513_s27 = smov 94  }
  0x2e   :  { %v3610_v43 = vsub.f32 %v59_v16, %v84_v32  ;;  %v3615_v46 = vpack.c.bf16 %v88_v34, %v84_v32  ;;  %v3617_v47 = vsub.f32 %v63_v21, %v88_v34  ;;  %v3619_v48 = vpack.c.bf16 %v631_v36, %v627_v35 }
  0x2f   :  { %v3621_v49 = vsub.f32 %v61_v22, %v627_v35  ;;  %3090 = vmatpush1.bf16.msra.mxu1 %v3604_v40  ;;  %v3624_v50 = vsub.f32 %v65_v23, %v631_v36  ;;  %v90_v51 = vand.u32 4294901760, %v62_v37  ;;  %v3626_v52 = vsub.f32 %v58_v28, %v86_v38 }
  0x30   :  { %v629_v53 = vand.u32 4294901760, %v60_v39  ;;  %3044 = vmatprep.subr.bf16.mxu0 %v3615_v46  ;;  %3092 = vmatprep.subr.bf16.mxu1 %v3619_v48  ;;  %v633_v54 = vand.u32 4294901760, %v64_v44  ;;  %v74_v55 = vsel %vm72_vm0, %v49_v45, 0  ;;  %v162_v56 = vand.u32 4294901760, %v3582_v18 }
  0x31   :  { %v174_v57 = vand.u32 4294901760, %v3584_v19  ;;  %v3633_v58 = vpack.c.bf16 %v90_v51, %v86_v38  ;;  %v3635_v59 = vsub.f32 %v62_v37, %v90_v51  ;;  %v3639_v61 = vand.u32 4294901760, %v74_v55 }
  0x32   :  { %v3637_v60 = vsub.f32 %v60_v39, %v629_v53  ;;  %v3641_v62 = vpack.c.bf16 %v633_v54, %v629_v53  ;;  %v3643_v63 = vsub.f32 %v64_v44, %v633_v54  ;;  %v163_v1 = vsub.f32 %v3582_v18, %v162_v56 }
  0x33   :  { %v175_v2 = vsub.f32 %v3584_v19, %v174_v57  ;;  %3046 = vmatpush1.bf16.msra.mxu0 %v3633_v58  ;;  %v3653_v3 = vsub.f32 %v74_v55, %v3639_v61  ;;  %v705_v4 = vand.u32 4294901760, %v3586_v20  ;;  %v717_v5 = vand.u32 4294901760, %v3590_v25 }
  0x34   :  { %v168_v6 = vand.u32 4294901760, %v3594_v27  ;;  %3094 = vmatpush1.bf16.msra.mxu1 %v3641_v62  ;;  %v164_v7 = vand.u32 4294901760, %v163_v1  ;;  %v180_v9 = vand.u32 4294901760, %v3597_v29  ;;  %v711_v10 = vand.u32 4294901760, %v3606_v41 }
  0x35   :  { %v176_v8 = vand.u32 4294901760, %v175_v2  ;;  %v3662_v11 = vand.u32 4294901760, %v3653_v3  ;;  %v706_v12 = vsub.f32 %v3586_v20, %v705_v4  ;;  %v718_v13 = vsub.f32 %v3590_v25, %v717_v5 }
  0x36   :  { %v169_v14 = vsub.f32 %v3594_v27, %v168_v6  ;;  %v181_v16 = vsub.f32 %v3597_v29, %v180_v9  ;;  %v712_v21 = vsub.f32 %v3606_v41, %v711_v10  ;;  %v723_v22 = vand.u32 4294901760, %v3608_v42 }
  0x37   :  { %v3047_v15 = vpack.c.bf16 %v176_v8, %v164_v7  ;;  %v152_v23 = vsub.f32 %v3653_v3, %v3662_v11  ;;  %v707_v28 = vand.u32 4294901760, %v706_v12  ;;  %v719_v30 = vand.u32 4294901760, %v718_v13 }
  0x38   :  { %v170_v31 = vand.u32 4294901760, %v169_v14  ;;  %v182_v32 = vand.u32 4294901760, %v181_v16  ;;  %v713_v33 = vand.u32 4294901760, %v712_v21  ;;  %v724_v34 = vsub.f32 %v3608_v42, %v723_v22 }
  0x39   :  { %3048 = vmatprep.subr.bf16.mxu0 %v3047_v15  ;;  %v186_v35 = vand.u32 4294901760, %v3610_v43  ;;  %v153_v36 = vand.u32 4294901760, %v152_v23  ;;  %v3095_v37 = vpack.c.bf16 %v719_v30, %v707_v28  ;;  %v198_v38 = vand.u32 4294901760, %v3617_v47 }
  0x3a   :  { %v729_v39 = vand.u32 4294901760, %v3621_v49  ;;  %v3049_v44 = vpack.c.bf16 %v182_v32, %v170_v31  ;;  %v725_v45 = vand.u32 4294901760, %v724_v34  ;;  %v741_v53 = vand.u32 4294901760, %v3624_v50 }
  0x3b   :  { %v187_v51 = vsub.f32 %v3610_v43, %v186_v35  ;;  %154 = vmatmul.mubr.f32.vlgmr.msra.gmra.mrb[0].mxu0 %v153_v36  ;;  %697 = vmatmul.mubr.f32.vlgmr.msra.gmra.mrb[0].mxu1 %v153_v36  ;;  %v199_v54 = vsub.f32 %v3617_v47, %v198_v38  ;;  %v192_v1 = vand.u32 4294901760, %v3626_v52  ;;  %v204_v2 = vand.u32 4294901760, %v3635_v59 }
  0x3c   :  { %v730_v55 = vsub.f32 %v3621_v49, %v729_v39  ;;  %3096 = vmatprep.subr.bf16.mxu1 %v3095_v37  ;;  %3050 = vmatpush1.bf16.msra.mxu0 %v3049_v44  ;;  %v3097_v7 = vpack.c.bf16 %v725_v45, %v713_v33  ;;  %v742_v12 = vsub.f32 %v3624_v50, %v741_v53  ;;  %v735_v13 = vand.u32 4294901760, %v3637_v60 }
  0x3d   :  { %v188_v8 = vand.u32 4294901760, %v187_v51  ;;  %v200_v14 = vand.u32 4294901760, %v199_v54  ;;  %v193_v16 = vsub.f32 %v3626_v52, %v192_v1  ;;  %v205_v21 = vsub.f32 %v3635_v59, %v204_v2  ;;  %264 = vmatprep.mubr.f32.mxu0 %v4808_v0  ;;  %807 = vmatprep.mubr.f32.mxu1 %v4808_v0 }
  0x3e   :  { %v731_v15 = vand.u32 4294901760, %v730_v55  ;;  %3098 = vmatpush1.bf16.msra.mxu1 %v3097_v7  ;;  %v743_v23 = vand.u32 4294901760, %v742_v12  ;;  %v736_v28 = vsub.f32 %v3637_v60, %v735_v13  ;;  %v747_v30 = vand.u32 4294901760, %v3643_v63 }
  0x3f   :  { %v3051_v31 = vpack.c.bf16 %v200_v14, %v188_v8  ;;  %v194_v32 = vand.u32 4294901760, %v193_v16  ;;  %v206_v33 = vand.u32 4294901760, %v205_v21  ;;  %v3055_v44 = vpack.c.bf16 %v3584_v19, %v3582_v18 }
  0x40   :  { %v3099_v34 = vpack.c.bf16 %v743_v23, %v731_v15  ;;  %v737_v36 = vand.u32 4294901760, %v736_v28  ;;  %v748_v37 = vsub.f32 %v3643_v63, %v747_v30  ;;  %v3103_v54 = vpack.c.bf16 %v3590_v25, %v3586_v20 }
  0x41   :  { %3052 = vmatprep.subr.bf16.mxu0 %v3051_v31  ;;  %v3053_v45 = vpack.c.bf16 %v206_v33, %v194_v32  ;;  %v3057_v55 = vpack.c.bf16 %v3597_v29, %v3594_v27  ;;  %v3059_v8 = vpack.c.bf16 %v3617_v47, %v3610_v43  ;;  %v3105_v12 = vpack.c.bf16 %v3608_v42, %v3606_v41 }
  0x42   :  { %3100 = vmatprep.subr.bf16.mxu1 %v3099_v34  ;;  %v749_v51 = vand.u32 4294901760, %v748_v37  ;;  %v3107_v14 = vpack.c.bf16 %v3624_v50, %v3621_v49  ;;  %v3061_v15 = vpack.c.bf16 %v3635_v59, %v3626_v52  ;;  %v3109_v16 = vpack.c.bf16 %v3643_v63, %v3637_v60 }
  0x43   :  { %3054 = vmatpush1.bf16.msra.mxu0 %v3053_v45  ;;  %v3071_v63 = vpack.c.bf16 %v174_v57, %v162_v56  ;;  %v3119_v21 = vpack.c.bf16 %v717_v5, %v705_v4  ;;  %v3073_v18 = vpack.c.bf16 %v180_v9, %v168_v6  ;;  %v3075_v19 = vpack.c.bf16 %v198_v38, %v186_v35 }
  0x44   :  { %v3101_v7 = vpack.c.bf16 %v749_v51, %v737_v36  ;;  %3056 = vmatprep.subr.bf16.mxu0 %v3055_v44  ;;  %v3121_v20 = vpack.c.bf16 %v723_v22, %v711_v10  ;;  %v3123_v25 = vpack.c.bf16 %v741_v53, %v729_v39  ;;  %v3077_v27 = vpack.c.bf16 %v204_v2, %v192_v1  ;;  %v1309_v22 = vld [vmem:[%s4799_s2 + $0x8] sm:$0xff] }
  0x45   :  { %v3125_v29 = vpack.c.bf16 %v747_v30, %v735_v13  ;;  %v1178_v4 = vlaneseq  ;;  %vm1358_vm1 = vcmask 588800  }
  0x46   :  { %3102 = vmatpush1.bf16.msra.mxu1 %v3101_v7  ;;  %266 = vmatmul.mubr.f32.vlgmr.msra.gmra.mrb[0].mxu0 %v3639_v61  ;;  %v1363_v13 = vsel %vm1358_vm1, %v1309_v22, 0 }
  0x47   :  { %3104 = vmatprep.subr.bf16.mxu1 %v3103_v54  ;;  %3058 = vmatpush1.bf16.msra.mxu0 %v3057_v55  ;;  %v3867_v9 = vand.u32 127, %v1178_v4  ;;  %v3900_v36 = vand.u32 4294901760, %v1363_v13 }
  0x48   :  { %3060 = vmatprep.subr.bf16.mxu0 %v3059_v8  ;;  %352 = vmatprep.mubr.f32.mxu0 %v4808_v0 }
  0x49   :  { %809 = vmatmul.mubr.f32.vlgmr.msra.gmra.mrb[0].mxu1 %v3639_v61  ;;  %4892 = vst [vmem:[#allocation12_spill] sm:$0xff] %v3867_v9  ;;  %vm1180_vm2 = vcmp.lt.s32.totalorder %v3867_v9, 127  ;;  %4894 = vst [vmem:[#allocation14_spill] sm:$0xff] %v3900_v36  ;;  %vm1197_vm3 = vcmp.lt.s32.totalorder %v3867_v9, 126  ;;  %vm1214_vm4 = vcmp.lt.s32.totalorder %v3867_v9, 112  ;;  %vm1231_vm5 = vcmp.lt.s32.totalorder %v3867_v9, 111 }
  0x4a   :  { %3106 = vmatpush1.bf16.msra.mxu1 %v3105_v12  ;;  %895 = vmatprep.mubr.f32.mxu1 %v4808_v0  ;;  %vm1248_vm6 = vcmp.lt.s32.totalorder %v3867_v9, 110  ;;  %vm1265_vm7 = vcmp.lt.s32.totalorder %v3867_v9, 96  ;;  %vm1282_vm8 = vcmp.lt.s32.totalorder %v3867_v9, 95  ;;  %vm1299_vm9 = vcmp.lt.s32.totalorder %v3867_v9, 94 }
  0x4b   :  { %3108 = vmatprep.subr.bf16.mxu1 %v3107_v14  ;;  %3062 = vmatpush1.bf16.msra.mxu0 %v3061_v15 }
  0x4c   :  { %3064 = vmatprep.subr.bf16.mxu0 %v3580_v17 }
  0x4e   :  { %3110 = vmatpush1.bf16.msra.mxu1 %v3109_v16  ;;  %355 = vmatmul.mubr.f32.vlgmr.msra.gmra.mrb[0].mxu0 %v3653_v3 }
  0x4f   :  { %3112 = vmatprep.subr.bf16.mxu1 %v3588_v24  ;;  %3066 = vmatpush1.bf16.msra.mxu0 %v3592_v26 }
  0x50   :  { %3068 = vmatprep.subr.bf16.mxu0 %v3615_v46  ;;  %433 = vmatprep.mubr.f32.mxu0 %v4808_v0 }
  0x51   :  { %898 = vmatmul.mubr.f32.vlgmr.msra.gmra.mrb[0].mxu1 %v3653_v3 }
  0x52   :  { %3114 = vmatpush1.bf16.msra.mxu1 %v3604_v40  ;;  %976 = vmatprep.mubr.f32.mxu1 %v4808_v0 }
  0x53   :  { %3116 = vmatprep.subr.bf16.mxu1 %v3619_v48  ;;  %3070 = vmatpush1.bf16.msra.mxu0 %v3633_v58 }
  0x54   :  { %3072 = vmatprep.subr.bf16.mxu0 %v3071_v63 }
  0x56   :  { %3118 = vmatpush1.bf16.msra.mxu1 %v3641_v62  ;;  %437 = vmatmul.mubr.f32.vlgmr.msra.gmra.mrb[0].mxu0 %v3662_v11 }
  0x57   :  { %3120 = vmatprep.subr.bf16.mxu1 %v3119_v21  ;;  %3074 = vmatpush1.bf16.msra.mxu0 %v3073_v18  ;;  %v3920_v21 = vsub.f32 %v1363_v13, %v3900_v36 }
  0x58   :  { %3076 = vmatprep.subr.bf16.mxu0 %v3075_v19  ;;  %531 = vmatprep.mubr.f32.mxu0 %v4808_v0 }
  0x59   :  { %980 = vmatmul.mubr.f32.vlgmr.msra.gmra.mrb[0].mxu1 %v3662_v11  ;;  %v1308_v11 = vld [vmem:[%s4799_s2] sm:$0xff]  ;;  %4898 = vst [vmem:[#allocation18_spill] sm:$0xff] %v3920_v21 }
  0x5a   :  { %3122 = vmatpush1.bf16.msra.mxu1 %v3121_v20  ;;  %1074 = vmatprep.mubr.f32.mxu1 %v4808_v0  ;;  %v1360_v2 = vsel %vm1358_vm1, %v1308_v11, 0 }
  0x5b   :  { %3124 = vmatprep.subr.bf16.mxu1 %v3123_v25  ;;  %3078 = vmatpush1.bf16.msra.mxu0 %v3077_v27  ;;  %v3898_v34 = vand.u32 4294901760, %v1360_v2 }
  0x5c   :  { %3080 = vmatprep.subr.bf16.mxu0 %v3580_v17 }
  0x5d   :  { %v3917_v63 = vsub.f32 %v1360_v2, %v3898_v34 }
  0x5e   :  { %3126 = vmatpush1.bf16.msra.mxu1 %v3125_v29  ;;  %533 = vmatmul.mubr.f32.vlgmr.msra.gmra.mrb[0].mxu0 %v3639_v61 }
  0x5f   :  { %3128 = vmatprep.subr.bf16.mxu1 %v3588_v24  ;;  %3082 = vmatpush1.bf16.msra.mxu0 %v3592_v26  ;;  %4897 = vst [vmem:[#allocation17_spill] sm:$0xff] %v3917_v63 }
  0x60   :  { %3084 = vmatprep.subr.bf16.mxu0 %v3615_v46  ;;  %611 = vmatprep.mubr.f32.mxu0 %v4808_v0 }
  0x61   :  { %1076 = vmatmul.mubr.f32.vlgmr.msra.gmra.mrb[0].mxu1 %v3639_v61 }
  0x62   :  { %3130 = vmatpush1.bf16.msra.mxu1 %v3604_v40  ;;  %1154 = vmatprep.mubr.f32.mxu1 %v4808_v0 }
  0x63   :  { %3132 = vmatprep.subr.bf16.mxu1 %v3619_v48  ;;  %3086 = vmatpush1.bf16.msra.mxu0 %v3633_v58 }
  0x66   :  { %3134 = vmatpush1.bf16.msra.mxu1 %v3641_v62  ;;  %613 = vmatmul.mubr.f32.vlgmr.msra.gmra.mrb[0].mxu0 %v3639_v61 }
  0x67   :  { %1447 = vmatprep.mubr.f32.mxu0 %v4808_v0 }
  0x69   :  { %1156 = vmatmul.mubr.f32.vlgmr.msra.gmra.mrb[0].mxu1 %v3639_v61 }
  0x6a   :  { %2169 = vmatprep.mubr.f32.mxu1 %v4808_v0 }
  0xac   :  { %v70_v24 = vpop.permute.xlu0 %69 }
 0x139   :  { %v614_v17 = vpop.f32.mrb[0].mxu0 }
 0x13a   :  { %v616_v26 = vpop.f32.mrb[1].mxu0  ;;  %v3327_v43 = vadd.f32 %v614_v17, %v70_v24 }
 0x13b   :  { %v3328_v48 = vadd.f32 %v616_v26, %v70_v24 }
 0x13c   :  { %v1157_v40 = vpop.f32.mrb[0].mxu1  ;;  %v3804_v47 = vmax.f32 %v3327_v43, 0.0 }
 0x13d   :  { %v3329_v41 = vadd.f32 %v1157_v40, %v70_v24  ;;  %v1159_v42 = vpop.f32.mrb[1].mxu1  ;;  %v3821_v49 = vmax.f32 %v3328_v48, 0.0 }
 0x13e   :  { %v3330_v50 = vadd.f32 %v1159_v42, %v70_v24  ;;  %v1367_v10 = vand.u32 4294901760, %v3804_v47  ;;  %v3949_v42 = vand.u32 4294901760, %v3917_v63 }
 0x13f   :  { %v3799_v46 = vmax.f32 %v3329_v41, 0.0  ;;  %v1365_v38 = vand.u32 4294901760, %v3821_v49 }
 0x140   :  { %v3826_v52 = vmax.f32 %v3330_v50, 0.0  ;;  %v3885_v23 = vsub.f32 %v3804_v47, %v1367_v10  ;;  %4900 = vst [vmem:[#allocation20_spill] sm:$0xff] %v3949_v42 }
 0x141   :  { %1193 = vrot.lane.b32.xlu0 %v3799_v46, %s3506_s1  ;;  %1174 = vrot.lane.b32.xlu1 %v3799_v46, %s3507_s21  ;;  %v2089_v35 = vand.u32 4294901760, %v3799_v46  ;;  %v3891_v30 = vsub.f32 %v3821_v49, %v1365_v38 }
 0x142   :  { %v2087_v39 = vand.u32 4294901760, %v3826_v52  ;;  %v4805_v54 = vand.u32 4294901760, %v3885_v23 }
 0x143   :  { %v3888_v28 = vsub.f32 %v3799_v46, %v2089_v35  ;;  %v4807_v55 = vand.u32 4294901760, %v3891_v30 }
 0x144   :  { %v3894_v31 = vsub.f32 %v3826_v52, %v2087_v39  ;;  %v3933_v27 = vsub.f32 %v3885_v23, %v4805_v54 }
 0x145   :  { %1210 = vrot.lane.b32.xlu0 %v3799_v46, %s3508_s22  ;;  %1170 = vrot.lane.b32.xlu1 %v3804_v47, %s3507_s21  ;;  %4893 = vst [vmem:[#allocation13_spill] sm:$0xff] %v3888_v28  ;;  %v4803_v8 = vand.u32 4294901760, %v3888_v28  ;;  %v3939_v17 = vsub.f32 %v3891_v30, %v4807_v55 }
 0x146   :  { %v4804_v7 = vand.u32 4294901760, %v3894_v31 }
 0x147   :  { %v3944_v24 = vsub.f32 %v3888_v28, %v4803_v8 }
 0x148   :  { %v3954_v43 = vsub.f32 %v3894_v31, %v4804_v7 }
 0x149   :  { %1227 = vrot.lane.b32.xlu0 %v3799_v46, %s3509_s23  ;;  %1189 = vrot.lane.b32.xlu1 %v3804_v47, %s3506_s1 }
 0x14d   :  { %1244 = vrot.lane.b32.xlu0 %v3799_v46, %s3510_s24  ;;  %1206 = vrot.lane.b32.xlu1 %v3804_v47, %s3508_s22 }
 0x151   :  { %1261 = vrot.lane.b32.xlu0 %v3799_v46, %s3511_s25  ;;  %1223 = vrot.lane.b32.xlu1 %v3804_v47, %s3509_s23 }
 0x155   :  { %1278 = vrot.lane.b32.xlu0 %v3799_v46, %s3512_s26  ;;  %1240 = vrot.lane.b32.xlu1 %v3804_v47, %s3510_s24 }
 0x159   :  { %1172 = vrot.lane.b32.xlu0 %v3821_v49, %s3507_s21  ;;  %1257 = vrot.lane.b32.xlu1 %v3804_v47, %s3511_s25 }
 0x15d   :  { %1176 = vrot.lane.b32.xlu0 %v3826_v52, %s3507_s21  ;;  %1274 = vrot.lane.b32.xlu1 %v3804_v47, %s3512_s26 }
 0x161   :  { %1195 = vrot.lane.b32.xlu0 %v3826_v52, %s3506_s1  ;;  %1191 = vrot.lane.b32.xlu1 %v3821_v49, %s3506_s1 }
 0x165   :  { %1212 = vrot.lane.b32.xlu0 %v3826_v52, %s3508_s22  ;;  %1208 = vrot.lane.b32.xlu1 %v3821_v49, %s3508_s22 }
 0x169   :  { %1229 = vrot.lane.b32.xlu0 %v3826_v52, %s3509_s23  ;;  %1225 = vrot.lane.b32.xlu1 %v3821_v49, %s3509_s23 }
 0x16d   :  { %1246 = vrot.lane.b32.xlu0 %v3826_v52, %s3510_s24  ;;  %1242 = vrot.lane.b32.xlu1 %v3821_v49, %s3510_s24 }
 0x171   :  { %1263 = vrot.lane.b32.xlu0 %v3826_v52, %s3511_s25  ;;  %1259 = vrot.lane.b32.xlu1 %v3821_v49, %s3511_s25 }
 0x175   :  { %1280 = vrot.lane.b32.xlu0 %v3826_v52, %s3512_s26  ;;  %1276 = vrot.lane.b32.xlu1 %v3821_v49, %s3512_s26 }
 0x179   :  { %1295 = vrot.lane.b32.xlu0 %v3799_v46, %s3513_s27  ;;  %1293 = vrot.lane.b32.xlu1 %v3821_v49, %s3513_s27  ;;  %v3957_v46 = vand.u32 4294901760, %v3920_v21 }
 0x17b   :  { %4901 = vst [vmem:[#allocation21_spill] sm:$0xff] %v3957_v46 }
 0x17d   :  { %1297 = vrot.lane.b32.xlu0 %v3826_v52, %s3513_s27  ;;  %1291 = vrot.lane.b32.xlu1 %v3804_v47, %s3513_s27 }
 0x1b3   :  { %v3851_v56 = vpop.permute.xlu0 %1193  ;;  %v1175_v57 = vpop.permute.xlu1 %1174 }
 0x1b7   :  { %v3853_v58 = vpop.permute.xlu0 %1210  ;;  %v1171_v59 = vpop.permute.xlu1 %1170 }
 0x1bb   :  { %v3855_v60 = vpop.permute.xlu0 %1227  ;;  %v3857_v61 = vpop.permute.xlu1 %1189 }
 0x1bf   :  { %v3859_v62 = vpop.permute.xlu0 %1244  ;;  %v3861_v3 = vpop.permute.xlu1 %1206 }
 0x1c3   :  { %v3863_v5 = vpop.permute.xlu0 %1261  ;;  %v3865_v6 = vpop.permute.xlu1 %1223 }
 0x1c7   :  { %v3879_v53 = vpop.permute.xlu0 %1278  ;;  %v3881_v1 = vpop.permute.xlu1 %1240 }
 0x1cb   :  { %v1173_v32 = vpop.permute.xlu0 %1172  ;;  %v3896_v33 = vpop.permute.xlu1 %1257 }
 0x1cc   :  { %v1182_v37 = vsel %vm1180_vm2, %v1173_v32, %v1175_v57  ;;  %v1183_v44 = vsel %vm1180_vm2, %v1171_v59, %v1173_v32  ;;  %v1462_v32 = vsub.f32 %v3920_v21, %v3957_v46 }
 0x1cd   :  { %v1369_v45 = vand.u32 4294901760, %v1182_v37  ;;  %v1371_v51 = vand.u32 4294901760, %v1183_v44 }
 0x1cf   :  { %v3910_v12 = vpack.c.bf16 %v1371_v51, %v1367_v10  ;;  %v1177_v14 = vpop.permute.xlu0 %1176  ;;  %v3912_v15 = vpop.permute.xlu1 %1274  ;;  %v3914_v16 = vpack.c.bf16 %v1369_v45, %v1365_v38  ;;  %v3926_v20 = vsub.f32 %v1183_v44, %v1371_v51  ;;  %v3971_v52 = vsub.f32 %v1182_v37, %v1369_v45 }
 0x1d0   :  { %v1181_v18 = vsel %vm1180_vm2, %v1175_v57, %v1177_v14  ;;  %v1184_v19 = vsel %vm1180_vm2, %v1177_v14, %v1171_v59 }
 0x1d1   :  { %4895 = vst [vmem:[#allocation15_spill] sm:$0xff] %v3910_v12  ;;  %4896 = vst [vmem:[#allocation16_spill] sm:$0xff] %v3914_v16  ;;  %v2091_v25 = vand.u32 4294901760, %v1184_v19  ;;  %3136 = vmatprep.subr.bf16.mxu0 %v3914_v16  ;;  %v2093_v29 = vand.u32 4294901760, %v1181_v18  ;;  %v4806_v57 = vand.u32 4294901760, %v3926_v20  ;;  %v4811_v45 = vand.u32 4294901760, %v3971_v52 }
 0x1d2   :  { %3138 = vmatpush1.bf16.msra.mxu0 %v3910_v12 }
 0x1d3   :  { %v1196_v26 = vpop.permute.xlu0 %1195  ;;  %v1192_v40 = vpop.permute.xlu1 %1191  ;;  %v3946_v41 = vpack.c.bf16 %v2091_v25, %v2087_v39  ;;  %v3959_v47 = vpack.c.bf16 %v2093_v29, %v2089_v35  ;;  %v3961_v48 = vsub.f32 %v1181_v18, %v2093_v29  ;;  %v1451_v39 = vsub.f32 %v3917_v63, %v3949_v42 }
 0x1d4   :  { %v1198_v49 = vsel %vm1197_vm3, %v3851_v56, %v1196_v26  ;;  %v3969_v50 = vsel %vm1197_vm3, %v1196_v26, %v3857_v61  ;;  %v1200_v11 = vsel %vm1197_vm3, %v3857_v61, %v1192_v40  ;;  %v1199_v61 = vsel %vm1197_vm3, %v1192_v40, %v3851_v56 }
 0x1d5   :  { %4899 = vst [vmem:[#allocation19_spill] sm:$0xff] %v3946_v41  ;;  %4902 = vst [vmem:[#allocation22_spill] sm:$0xff] %v3959_v47  ;;  %3232 = vmatprep.subr.bf16.mxu1 %v3946_v41  ;;  %v4812_v4 = vand.u32 4294901760, %v3969_v50  ;;  %v2097_v10 = vand.u32 4294901760, %v1198_v49  ;;  %v4810_v37 = vand.u32 4294901760, %v3961_v48  ;;  %v4001_v51 = vsub.f32 %v3926_v20, %v4806_v57 }
 0x1d6   :  { %4903 = vst [vmem:[#allocation23_spill] sm:$0xff] %v3961_v48  ;;  %3234 = vmatpush1.bf16.msra.mxu1 %v3959_v47  ;;  %v4003_v14 = vsub.f32 %v1184_v19, %v2091_v25  ;;  %v1375_v18 = vand.u32 4294901760, %v1200_v11  ;;  %v1373_v8 = vand.u32 4294901760, %v1199_v61  ;;  %v4016_v19 = vand.u32 4294901760, %v1451_v39 }
 0x1d7   :  { %v1213_v35 = vpop.permute.xlu0 %1212  ;;  %v1209_v38 = vpop.permute.xlu1 %1208  ;;  %v4008_v56 = vsub.f32 %v3969_v50, %v4812_v4  ;;  %v4010_v29 = vsub.f32 %v1198_v49, %v2097_v10  ;;  %v4018_v25 = vand.u32 4294901760, %v1462_v32  ;;  %v4023_v57 = vsub.f32 %v3961_v48, %v4810_v37 }
 0x1d8   :  { %v1215_v44 = vsel %vm1214_vm4, %v3853_v58, %v1213_v35  ;;  %v1217_v40 = vsel %vm1214_vm4, %v3861_v3, %v1209_v38  ;;  %v1218_v49 = vsel %vm1214_vm4, %v1213_v35, %v3861_v3  ;;  %v1216_v55 = vsel %vm1214_vm4, %v1209_v38, %v3853_v58 }
 0x1d9   :  { %4904 = vst [vmem:[#allocation24_spill] sm:$0xff] %v4010_v29  ;;  %v2101_v26 = vand.u32 4294901760, %v1215_v44  ;;  %v1379_v0 = vand.u32 4294901760, %v1217_v40  ;;  %v4031_v13 = vsub.f32 %v1200_v11, %v1375_v18  ;;  %v4043_v37 = vsub.f32 %v3971_v52, %v4811_v45 }
 0x1da   :  { %v2099_v38 = vand.u32 4294901760, %v1218_v49  ;;  %v4058_v35 = vsub.f32 %v1199_v61, %v1373_v8 }
 0x1db   :  { %v1230_v7 = vpop.permute.xlu0 %1229  ;;  %v1226_v54 = vpop.permute.xlu1 %1225  ;;  %4905 = vst [vmem:[#allocation25_spill] sm:$0xff] %v4031_v13  ;;  %v4033_v39 = vsub.f32 %v1215_v44, %v2101_v26  ;;  %v1377_v44 = vand.u32 4294901760, %v1216_v55  ;;  %v4050_v2 = vsub.f32 %v1217_v40, %v1379_v0  ;;  %v4067_v4 = vpack.c.bf16 %v2101_v26, %v2097_v10 }
 0x1dc   :  { %v4038_v32 = vsel %vm1231_vm5, %v3855_v60, %v1230_v7  ;;  %v4055_v59 = vsel %vm1231_vm5, %v1230_v7, %v3865_v6  ;;  %v4064_v11 = vsel %vm1231_vm5, %v1226_v54, %v3855_v60  ;;  %v1234_v46 = vsel %vm1231_vm5, %v3865_v6, %v1226_v54 }
 0x1dd   :  { %4906 = vst [vmem:[#allocation26_spill] sm:$0xff] %v4033_v39  ;;  %4907 = vst [vmem:[#allocation27_spill] sm:$0xff] %v4050_v2  ;;  %v2105_v58 = vand.u32 4294901760, %v4038_v32  ;;  %v4073_v3 = vpack.c.bf16 %v1379_v0, %v1375_v18  ;;  %v4825_v61 = vand.u32 4294901760, %v4050_v2  ;;  %v1383_v21 = vand.u32 4294901760, %v1234_v46 }
 0x1de   :  { %4908 = vst [vmem:[#allocation28_spill] sm:$0xff] %v4067_v4  ;;  %v1381_v40 = vand.u32 4294901760, %v4064_v11  ;;  %v4081_v10 = vpack.c.bf16 %v1377_v44, %v1373_v8  ;;  %v4912_v26 = vand.u32 4294901760, %v3969_v50  ;;  %v4914_v0 = vand.u32 4294901760, %v4010_v29 }
 0x1df   :  { %v1247_v45 = vpop.permute.xlu0 %1246  ;;  %v1243_v22 = vpop.permute.xlu1 %1242  ;;  %4909 = vst [vmem:[#allocation29_spill] sm:$0xff] %v4073_v3  ;;  %v4078_v60 = vsub.f32 %v4038_v32, %v2105_v58  ;;  %v4092_v54 = vsub.f32 %v1218_v49, %v2099_v38  ;;  %v4094_v18 = vsub.f32 %v1234_v46, %v1383_v21  ;;  %v4916_v50 = vand.u32 4294901760, %v4031_v13 }
 0x1e0   :  { %4911 = vst [vmem:[#allocation31_spill] sm:$0xff] %v4081_v10  ;;  %v4085_v7 = vpack.c.bf16 %v2099_v38, %v4912_v26  ;;  %v4090_v6 = vsub.f32 %v4010_v29, %v4914_v0  ;;  %v1249_v32 = vsel %vm1248_vm6, %v3859_v62, %v1247_v45  ;;  %v4917_v42 = vand.u32 4294901760, %v4033_v39  ;;  %3140 = vmatprep.subr.bf16.mxu0 %v4081_v10 }
 0x1e1   :  { %4910 = vst [vmem:[#allocation30_spill] sm:$0xff] %v4078_v60  ;;  %4915 = vst [vmem:[#allocation33_spill] sm:$0xff] %v4094_v18  ;;  %v4103_v26 = vsub.f32 %v4031_v13, %v4916_v50  ;;  %v4110_v49 = vsub.f32 %v1216_v55, %v1377_v44  ;;  %v2109_v46 = vand.u32 4294901760, %v1249_v32  ;;  %v4118_v41 = vsub.f32 %v4050_v2, %v4825_v61 }
 0x1e2   :  { %4913 = vst [vmem:[#allocation32_spill] sm:$0xff] %v4085_v7  ;;  %v4108_v0 = vsub.f32 %v4033_v39, %v4917_v42  ;;  %3236 = vmatprep.subr.bf16.mxu1 %v4085_v7  ;;  %v4918_v50 = vand.u32 4294901760, %v4055_v59  ;;  %3142 = vmatpush1.bf16.msra.mxu0 %v4073_v3  ;;  %v1252_v55 = vsel %vm1248_vm6, %v1247_v45, %v3881_v1  ;;  %v4921_v29 = vand.u32 4294901760, %v4094_v18 }
 0x1e3   :  { %v1264_v47 = vpop.permute.xlu0 %1263  ;;  %v1260_v8 = vpop.permute.xlu1 %1259  ;;  %3238 = vmatpush1.bf16.msra.mxu1 %v4067_v4  ;;  %v4132_v44 = vsub.f32 %v4064_v11, %v1381_v40  ;;  %v1250_v61 = vsel %vm1248_vm6, %v1243_v22, %v3859_v62  ;;  %v4143_v45 = vsub.f32 %v1249_v32, %v2109_v46  ;;  %v2107_v7 = vand.u32 4294901760, %v1252_v55 }
 0x1e4   :  { %v4123_v12 = vsub.f32 %v4055_v59, %v4918_v50  ;;  %v1251_v50 = vsel %vm1248_vm6, %v3881_v1, %v1243_v22  ;;  %v1266_v62 = vsel %vm1265_vm7, %v3863_v5, %v1264_v47  ;;  %v1385_v4 = vand.u32 4294901760, %v1250_v61 }
 0x1e5   :  { %4919 = vst [vmem:[#allocation34_spill] sm:$0xff] %v4143_v45  ;;  %v1387_v10 = vand.u32 4294901760, %v1251_v50  ;;  %v4920_v11 = vand.u32 4294901760, %v4078_v60  ;;  %v2113_v39 = vand.u32 4294901760, %v1266_v62  ;;  %v4163_v1 = vsub.f32 %v4094_v18, %v4921_v29 }
 0x1e6   :  { %v4165_v22 = vpack.c.bf16 %v2109_v46, %v2105_v58  ;;  %v1269_v3 = vsel %vm1265_vm7, %v1264_v47, %v3896_v33  ;;  %v4171_v36 = vsub.f32 %v1252_v55, %v2107_v7  ;;  %v1268_v16 = vsel %vm1265_vm7, %v3896_v33, %v1260_v8 }
 0x1e7   :  { %v1281_v42 = vpop.permute.xlu0 %1280  ;;  %v1277_v32 = vpop.permute.xlu1 %1276  ;;  %v4157_v63 = vsub.f32 %v4078_v60, %v4920_v11  ;;  %v4173_v11 = vpack.c.bf16 %v1387_v10, %v1383_v21  ;;  %v4175_v60 = vsub.f32 %v1251_v50, %v1387_v10  ;;  %v4180_v29 = vsub.f32 %v1250_v61, %v1385_v4 }
 0x1e8   :  { %4922 = vst [vmem:[#allocation35_spill] sm:$0xff] %v4165_v22  ;;  %v1267_v58 = vsel %vm1265_vm7, %v1260_v8, %v3863_v5  ;;  %v1391_v46 = vand.u32 4294901760, %v1268_v16  ;;  %v4185_v38 = vpack.c.bf16 %v1385_v4, %v1381_v40  ;;  %v2111_v55 = vand.u32 4294901760, %v1269_v3 }
 0x1e9   :  { %4923 = vst [vmem:[#allocation36_spill] sm:$0xff] %v4173_v11  ;;  %v4187_v18 = vsub.f32 %v1266_v62, %v2113_v39  ;;  %v4925_v21 = vand.u32 4294901760, %v4055_v59  ;;  %v1283_v33 = vsel %vm1282_vm8, %v3879_v53, %v1281_v42  ;;  %v4927_v5 = vand.u32 4294901760, %v4143_v45 }
 0x1ea   :  { %4924 = vst [vmem:[#allocation37_spill] sm:$0xff] %v4185_v38  ;;  %3144 = vmatprep.subr.bf16.mxu0 %v4185_v38  ;;  %v1286_v59 = vsel %vm1282_vm8, %v1281_v42, %v3912_v15  ;;  %v1389_v8 = vand.u32 4294901760, %v1267_v58  ;;  %v1284_v42 = vsel %vm1282_vm8, %v1277_v32, %v3879_v53  ;;  %v1285_v50 = vsel %vm1282_vm8, %v3912_v15, %v1277_v32 }
 0x1eb   :  { %v1296_v47 = vpop.permute.xlu0 %1295  ;;  %v4191_v10 = vpack.c.bf16 %v2107_v7, %v4925_v21  ;;  %v4201_v4 = vsub.f32 %v4143_v45, %v4927_v5  ;;  %v1294_v40 = vpop.permute.xlu1 %1293  ;;  %3146 = vmatpush1.bf16.msra.mxu0 %v4173_v11  ;;  %v2115_v62 = vand.u32 4294901760, %v1286_v59  ;;  %v2117_v21 = vand.u32 4294901760, %v1283_v33 }
 0x1ec   :  { %v4211_v5 = vsub.f32 %v1268_v16, %v1391_v46  ;;  %v1393_v61 = vand.u32 4294901760, %v1284_v42  ;;  %v1301_v45 = vsel %vm1299_vm9, %v1294_v40, %v1296_v47  ;;  %v4929_v15 = vand.u32 4294901760, %v4175_v60 }
 0x1ed   :  { %4926 = vst [vmem:[#allocation38_spill] sm:$0xff] %v4191_v10  ;;  %3240 = vmatprep.subr.bf16.mxu1 %v4191_v10  ;;  %v4221_v10 = vsub.f32 %v1269_v3, %v2111_v55  ;;  %v4224_v38 = vsub.f32 %v1283_v33, %v2117_v21  ;;  %v4226_v16 = vpack.c.bf16 %v2117_v21, %v2113_v39  ;;  %v4248_v48 = vand.u32 4294901760, %v1301_v45 }
 0x1ee   :  { %3242 = vmatpush1.bf16.msra.mxu1 %v4165_v22  ;;  %v1395_v22 = vand.u32 4294901760, %v1285_v50  ;;  %v4234_v32 = vsub.f32 %v4175_v60, %v4929_v15  ;;  %v4236_v3 = vsub.f32 %v1267_v58, %v1389_v8  ;;  %v4238_v7 = vpack.c.bf16 %v2115_v62, %v2111_v55 }
 0x1ef   :  { %4928 = vst [vmem:[#allocation39_spill] sm:$0xff] %v4226_v16  ;;  %v1298_v53 = vpop.permute.xlu0 %1297  ;;  %v4866_v39 = vand.u32 4294901760, %v4211_v5  ;;  %v4241_v33 = vsub.f32 %v1286_v59, %v2115_v62  ;;  %v1292_v13 = vpop.permute.xlu1 %1291  ;;  %v4869_v2 = vand.u32 4294901760, %v4224_v38  ;;  %4932 = vst [vmem:[#allocation42_spill] sm:$0xff] %v4248_v48  ;;  %v4250_v28 = vpack.c.bf16 %v1393_v61, %v1389_v8 }
 0x1f0   :  { %4930 = vst [vmem:[#allocation40_spill] sm:$0xff] %v4238_v7  ;;  %v4243_v21 = vpack.c.bf16 %v1395_v22, %v1391_v46  ;;  %v4245_v11 = vsub.f32 %v1285_v50, %v1395_v22  ;;  %3244 = vmatprep.subr.bf16.mxu1 %v4238_v7  ;;  %v1300_v58 = vsel %vm1299_vm9, %v1296_v47, %v1298_v53  ;;  %v4934_v59 = vand.u32 4294901760, %v4187_v18 }
 0x1f1   :  { %4933 = vst [vmem:[#allocation43_spill] sm:$0xff] %v4250_v28  ;;  %v4263_v50 = vand.u32 4294901760, %v1300_v58  ;;  %3148 = vmatprep.subr.bf16.mxu0 %v4250_v28  ;;  %v1302_v47 = vsel %vm1299_vm9, %v1292_v13, %v1294_v40  ;;  %v1303_v62 = vsel %vm1299_vm9, %v1298_v53, %v1292_v13  ;;  %v1486_v15 = vand.u32 4294901760, %v4043_v37 }
 0x1f2   :  { %4931 = vst [vmem:[#allocation41_spill] sm:$0xff] %v4243_v21  ;;  %v4259_v46 = vsub.f32 %v4187_v18, %v4934_v59  ;;  %3246 = vmatpush1.bf16.msra.mxu1 %v4226_v16  ;;  %v4275_v59 = vsub.f32 %v4211_v5, %v4866_v39  ;;  %v4277_v55 = vsub.f32 %v1284_v42, %v1393_v61  ;;  %v4280_v8 = vand.u32 4294901760, %v1302_v47 }
 0x1f3   :  { %4935 = vst [vmem:[#allocation44_spill] sm:$0xff] %v4263_v50  ;;  %3150 = vmatpush1.bf16.msra.mxu0 %v4243_v21  ;;  %v4282_v22 = vand.u32 4294901760, %v1303_v62  ;;  %v4288_v13 = vsub.f32 %v4224_v38, %v4869_v2  ;;  %v4937_v37 = vand.u32 4294901760, %v4003_v14  ;;  %v4938_v42 = vand.u32 4294901760, %v4058_v35 }
 0x1f4   :  { %4936 = vst [vmem:[#allocation45_spill] sm:$0xff] %v4280_v8  ;;  %1398 = vmatprep.subr.mxu0 %v4248_v48  ;;  %v4939_v39 = vand.u32 4294901760, %v4245_v11  ;;  %v4303_v40 = vsub.f32 %v1301_v45, %v4248_v48  ;;  %v4306_v2 = vsub.f32 %v1300_v58, %v4263_v50  ;;  %v4940_v16 = vand.u32 4294901760, %v3939_v17 }
 0x1f5   :  { %v2207_v61 = vsub.f32 %v4003_v14, %v4937_v37  ;;  %v1497_v53 = vsub.f32 %v4058_v35, %v4938_v42  ;;  %2120 = vmatprep.subr.mxu1 %v4282_v22  ;;  %v4312_v21 = vsub.f32 %v1302_v47, %v4280_v8  ;;  %v4941_v42 = vand.u32 4294901760, %v3933_v27 }
 0x1f6   :  { %v4300_v9 = vsub.f32 %v4245_v11, %v4939_v39  ;;  %v3151_v37 = vpack.c.bf16 %v1486_v15, %v4940_v16  ;;  %2122 = vmatpush1.msra.mxu1 %v4263_v50  ;;  %v4942_v39 = vand.u32 4294901760, %v4001_v51  ;;  %v4943_v48 = vand.u32 4294901760, %v4110_v49 }
 0x1f7   :  { %v2208_v45 = vand.u32 4294901760, %v2207_v61  ;;  %v4324_v17 = vsub.f32 %v1303_v62, %v4282_v22  ;;  %1400 = vmatpush1.msra.mxu0 %v4280_v8  ;;  %2175 = vmatmul.mubr.f32.vlgmr.msra.gmra.mrb[2].mxu1 %v4016_v19  ;;  %v4944_v16 = vand.u32 4294901760, %v4008_v56  ;;  %v4945_v51 = vand.u32 4294901760, %v4092_v54 }
 0x1f8   :  { %v3153_v7 = vpack.c.bf16 %v4942_v39, %v4941_v42  ;;  %v1509_v58 = vsub.f32 %v4110_v49, %v4943_v48  ;;  %3152 = vmatprep.subr.bf16.mxu0 %v3151_v37  ;;  %1453 = vmatmul.mubr.f32.vlgmr.msra.gmra.mrb[2].mxu0 %v4016_v19  ;;  %v4946_v48 = vand.u32 4294901760, %v3954_v43  ;;  %v1498_v62 = vand.u32 4294901760, %v1497_v53 }
 0x1f9   :  { %v2219_v27 = vsub.f32 %v4008_v56, %v4944_v16  ;;  %v2231_v47 = vsub.f32 %v4092_v54, %v4945_v51  ;;  %v4947_v42 = vand.u32 4294901760, %v4132_v44  ;;  %v4948_v28 = vand.u32 4294901760, %v3944_v24 }
 0x1fa   :  { %v3247_v15 = vpack.c.bf16 %v2208_v45, %v4946_v48  ;;  %v1510_v61 = vand.u32 4294901760, %v1509_v58  ;;  %3154 = vmatpush1.bf16.msra.mxu0 %v3153_v7  ;;  %v4949_v16 = vand.u32 4294901760, %v4023_v57  ;;  %v4950_v37 = vand.u32 4294901760, %v4180_v29 }
 0x1fb   :  { %v1521_v39 = vsub.f32 %v4132_v44, %v4947_v42  ;;  %v2220_v8 = vand.u32 4294901760, %v2219_v27  ;;  %v2232_v51 = vand.u32 4294901760, %v2231_v47  ;;  %v4951_v43 = vmov 0.0  }
 0x1fc   :  { %v3249_v50 = vpack.c.bf16 %v4949_v16, %v4948_v28  ;;  %v1533_v19 = vsub.f32 %v4180_v29, %v4950_v37  ;;  %1458 = vmatprep.mubr.f32.mxu0 %v4951_v43  ;;  %v1540_v53 = vand.u32 4294901760, %v4234_v32  ;;  %3248 = vmatprep.subr.bf16.mxu1 %v3247_v15  ;;  %v3155_v45 = vpack.c.bf16 %v1510_v61, %v1498_v62 }
 0x1fd   :  { %v4952_v58 = vand.u32 4294901760, %v4103_v26  ;;  %v4953_v7 = vand.u32 4294901760, %v4118_v41  ;;  %v4954_v57 = vand.u32 4294901760, %v4123_v12  ;;  %2180 = vmatprep.mubr.f32.mxu1 %v4951_v43  ;;  %v3251_v27 = vpack.c.bf16 %v2232_v51, %v2220_v8  ;;  %1464 = vmatmul.mubr.f32.gmra.mrb[4].mxu0 %v4018_v25 }
 0x1fe   :  { %3250 = vmatpush1.bf16.msra.mxu1 %v3249_v50  ;;  %v1522_v47 = vand.u32 4294901760, %v1521_v39  ;;  %v1534_v48 = vand.u32 4294901760, %v1533_v19  ;;  %v4955_v42 = vand.u32 4294901760, %v4171_v36  ;;  %3156 = vmatprep.subr.bf16.mxu0 %v3155_v45  ;;  %v4956_v26 = vand.u32 4294901760, %v4090_v6 }
 0x1ff   :  { %v3157_v24 = vpack.c.bf16 %v4953_v7, %v4952_v58  ;;  %v2243_v28 = vsub.f32 %v4123_v12, %v4954_v57  ;;  %v4957_v41 = vand.u32 4294901760, %v4108_v0  ;;  %v4958_v61 = vand.u32 4294901760, %v4236_v3  ;;  %3252 = vmatprep.subr.bf16.mxu1 %v3251_v27  ;;  %2186 = vmatmul.mubr.f32.gmra.mrb[4].mxu1 %v4018_v25 }
 0x200   :  { %v2255_v32 = vsub.f32 %v4171_v36, %v4955_v42  ;;  %v4959_v50 = vand.u32 4294901760, %v4277_v55  ;;  %v3159_v39 = vpack.c.bf16 %v1534_v48, %v1522_v47  ;;  %v4960_v6 = vand.u32 4294901760, %v4221_v10  ;;  %1624 = vmatprep.mubr.f32.mxu0 %v4951_v43  ;;  %2346 = vmatprep.mubr.f32.mxu1 %v4951_v43 }
 0x201   :  { %v3253_v15 = vpack.c.bf16 %v4957_v41, %v4956_v26  ;;  %v2244_v62 = vand.u32 4294901760, %v2243_v28  ;;  %v1545_v16 = vsub.f32 %v4236_v3, %v4958_v61  ;;  %3158 = vmatpush1.bf16.msra.mxu0 %v3157_v24  ;;  %v4961_v37 = vand.u32 4294901760, %v4241_v33 }
 0x202   :  { %v1557_v8 = vsub.f32 %v4277_v55, %v4959_v50  ;;  %v2256_v51 = vand.u32 4294901760, %v2255_v32  ;;  %v2267_v0 = vsub.f32 %v4221_v10, %v4960_v6  ;;  %v1564_v45 = vand.u32 4294901760, %v4300_v9  ;;  %3160 = vmatprep.subr.bf16.mxu0 %v3159_v39 }
 0x203   :  { %v2279_v19 = vsub.f32 %v4241_v33, %v4961_v37  ;;  %v1546_v58 = vand.u32 4294901760, %v1545_v16  ;;  %v4887_v57 = vand.u32 4294901760, %v4303_v40  ;;  %v4885_v24 = vand.u32 4294901760, %v4312_v21  ;;  %3254 = vmatpush1.bf16.msra.mxu1 %v3253_v15 }
 0x204   :  { %v1558_v7 = vand.u32 4294901760, %v1557_v8  ;;  %v3255_v28 = vpack.c.bf16 %v2256_v51, %v2244_v62  ;;  %v4962_v27 = vand.u32 4294901760, %v4163_v1  ;;  %v2268_v32 = vand.u32 4294901760, %v2267_v0 }
 0x205   :  { %v2280_v48 = vand.u32 4294901760, %v2279_v19  ;;  %v1569_v9 = vsub.f32 %v4303_v40, %v4887_v57  ;;  %v4886_v26 = vand.u32 4294901760, %v4324_v17  ;;  %v1552_v25 = vand.u32 4294901760, %v4275_v59 }
 0x206   :  { %v3161_v47 = vpack.c.bf16 %v1540_v53, %v4962_v27  ;;  %v3163_v42 = vpack.c.bf16 %v1558_v7, %v1546_v58  ;;  %v2286_v41 = vand.u32 4294901760, %v4288_v13  ;;  %v4884_v15 = vand.u32 4294901760, %v4306_v2  ;;  %3256 = vmatprep.subr.bf16.mxu1 %v3255_v28  ;;  %v4965_v58 = vld [vmem:[#allocation13_spill] sm:$0xff]  ;;  %v4966_v7 = vld [vmem:[#allocation23_spill] sm:$0xff] }
 0x207   :  { %v4963_v1 = vand.u32 4294901760, %v4157_v63  ;;  %v4964_v53 = vand.u32 4294901760, %v4201_v4  ;;  %v3259_v61 = vpack.c.bf16 %v2280_v48, %v2268_v32  ;;  %v2291_v16 = vsub.f32 %v4324_v17, %v4886_v26  ;;  %v4967_v27 = vld [vmem:[#allocation25_spill] sm:$0xff] }
 0x208   :  { %3162 = vmatpush1.bf16.msra.mxu0 %v3161_v47  ;;  %v2274_v50 = vand.u32 4294901760, %v4259_v46  ;;  %v1575_v59 = vsub.f32 %v4312_v21, %v4885_v24  ;;  %v3165_v13 = vpack.c.bf16 %v1564_v45, %v1552_v25  ;;  %v1570_v8 = vand.u32 4294901760, %v1569_v9  ;;  %v4968_v47 = vld [vmem:[#allocation27_spill] sm:$0xff]  ;;  %v4969_v9 = vld [vmem:[#allocation14_spill] sm:$0xff]  ;;  %v4970_v25 = vld [vmem:[#allocation24_spill] sm:$0xff] }
 0x209   :  { %v3257_v62 = vpack.c.bf16 %v4964_v53, %v4963_v1  ;;  %3164 = vmatprep.subr.bf16.mxu0 %v3163_v42  ;;  %v2297_v63 = vsub.f32 %v4306_v2, %v4884_v15  ;;  %v2292_v39 = vand.u32 4294901760, %v2291_v16  ;;  %v3167_v46 = vpack.c.bf16 %v3971_v52, %v3891_v30  ;;  %v4972_v53 = vld [vmem:[#allocation33_spill] sm:$0xff]  ;;  %v4438_v16 = vld [vmem:[%s4800_s3] sm:$0xff] }
 0x20a   :  { %v3261_v4 = vpack.c.bf16 %v2286_v41, %v2274_v50  ;;  %v1576_v51 = vand.u32 4294901760, %v1575_v59  ;;  %v3169_v6 = vpack.c.bf16 %v3926_v20, %v3885_v23  ;;  %v3514_v37 = vmov 1   ;;  %v4971_v41 = vld [vmem:[#allocation26_spill] sm:$0xff]  ;;  %4973 = vst [vmem:[#allocation13_spill] sm:$0xff] %v4438_v16  ;;  %v4446_v59 = vld [vmem:[%s4800_s3 + $0x8] sm:$0xff]  ;;  %s3517_s3 = smov [#allocation8]  }
 0x20b   :  { %3258 = vmatpush1.bf16.msra.mxu1 %v3257_v62  ;;  %v2298_v0 = vand.u32 4294901760, %v2297_v63  ;;  %3418 = vset.pattern.permute.xlu1 %v3514_v37  ;;  %v3263_v19 = vpack.c.bf16 %v4003_v14, %v3894_v31  ;;  %v3171_v45 = vpack.c.bf16 %v4110_v49, %v4058_v35  ;;  %v3265_v28 = vpack.c.bf16 %v4966_v7, %v4965_v58  ;;  %v4998_v26 = vld [vmem:[#allocation45_spill] sm:$0xff]  ;;  %s3026_s12 = sshll.u32 %s3517_s3, 4  ;;  %s3027_s12 = int_to_ptr.vmem [resolvable:$true] %s3026_s12 }
 0x20c   :  { %3260 = vmatprep.subr.bf16.mxu1 %v3259_v61  ;;  %3166 = vmatpush1.bf16.msra.mxu0 %v3165_v13  ;;  %v3173_v48 = vpack.c.bf16 %v4968_v47, %v4967_v27  ;;  %v3267_v42 = vpack.c.bf16 %v4092_v54, %v4008_v56  ;;  %v3175_v32 = vpack.c.bf16 %v4180_v29, %v4132_v44  ;;  %v4975_v13 = vld [vmem:[#allocation30_spill] sm:$0xff]  ;;  %v4997_v15 = vand.u32 4294901760, %v3971_v52  ;;  %s3472_s13 = scalar_lea.vmem %s3027_s12, 1024  ;;  %p3477_p3 = scmp.lt.s32.totalorder %s3027_s12, %s3027_s12 }
 0x20d   :  { %1571 = vmatprep.subr.mxu0 %v1570_v8  ;;  %v3269_v1 = vpack.c.bf16 %v4971_v41, %v4970_v25  ;;  %v3177_v62 = vpack.c.bf16 %v4175_v60, %v4972_v53  ;;  %v3271_v61 = vpack.c.bf16 %v4171_v36, %v4123_v12  ;;  %v3179_v50 = vpack.c.bf16 %v4277_v55, %v4236_v3  ;;  %v4976_v8 = vld [vmem:[#allocation34_spill] sm:$0xff]  ;;  %p3473_p2 = scmp.ne.s32.totalorder %s3027_s12, %s3472_s13  ;;  %p3478_p4 = scmp.lt.s32.totalorder %s3472_s13, %s3472_s13 }
 0x20e   :  { %4974 = vst [vmem:[#allocation23_spill] sm:$0xff] %v4446_v59  ;;  %v3273_v63 = vpack.c.bf16 %v4976_v8, %v4975_v13  ;;  %1350 = vperm.xlu1 %3418, %v4438_v16   ;;  %3419 = vset.pattern.permute.xlu0 %v3514_v37  ;;  %v4980_v37 = vld [vmem:[#allocation31_spill] sm:$0xff]  ;;  %v4999_v57 = vand.u32 4294901760, %v3885_v23  ;;  %v5004_v52 = vand.u32 4294901760, %v3894_v31  ;;  %v5006_v23 = vld [vmem:[#allocation44_spill] sm:$0xff]  ;;  %v5010_v31 = vand.u32 4294901760, %v4092_v54 }
 0x20f   :  { %3262 = vmatpush1.bf16.msra.mxu1 %v3261_v4  ;;  %v3181_v4 = vpack.c.bf16 %v4245_v11, %v4211_v5  ;;  %1355 = vperm.xlu0 %3419, %v4446_v59   ;;  %v5000_v59 = vand.u32 4294901760, %v3926_v20  ;;  %v5007_v20 = vand.u32 4294901760, %v4965_v58  ;;  %v5014_v58 = vand.u32 4294901760, %v4180_v29  ;;  %p3479_p5 = por %p3478_p4, %p3477_p3 }
 0x210   :  { %2293 = vmatprep.subr.mxu1 %v2292_v39  ;;  %1577 = vmatpush1.msra.mxu0 %v1576_v51  ;;  %v3275_v39 = vpack.c.bf16 %v4241_v33, %v4221_v10  ;;  %v3277_v51 = vpack.c.bf16 %v4224_v38, %v4187_v18  ;;  %v5017_v54 = vand.u32 4294901760, %v4971_v41  ;;  %v5020_v29 = vand.u32 4294901760, %v4972_v53 }
 0x211   :  { %3168 = vmatprep.subr.bf16.mxu0 %v3167_v46  ;;  %1626 = vmatmul.mubr.f32.vlgmr.msra.gmra.mrb[2].mxu0 %v3898_v34  ;;  %v4977_v46 = vld [vmem:[#allocation16_spill] sm:$0xff]  ;;  %v3201_v16 = vpack.c.bf16 %v5000_v59, %v4999_v57  ;;  %v5008_v57 = vand.u32 4294901760, %v4966_v7  ;;  %v5023_v41 = vand.u32 4294901760, %v4277_v55  ;;  %v5026_v53 = vand.u32 4294901760, %v4221_v10  ;;  %p3480_p6 = pnand %p3479_p5, %p3473_p2 }
 0x212   :  { %3170 = vmatpush1.bf16.msra.mxu0 %v3169_v6  ;;  %1631 = vmatprep.mubr.f32.mxu0 %v4951_v43  ;;  %v4978_v6 = vld [vmem:[#allocation17_spill] sm:$0xff]  ;;  %v5029_v55 = vand.u32 4294901760, %v4245_v11  ;;  %v5033_v10 = vand.u32 4294901760, %v4324_v17  ;;  %v5038_v11 = vld [vmem:[#allocation39_spill] sm:$0xff] }
 0x213   :  { %2299 = vmatpush1.msra.mxu1 %v2298_v0  ;;  %3172 = vmatprep.subr.bf16.mxu0 %v3171_v45  ;;  %v4979_v0 = vld [vmem:[#allocation15_spill] sm:$0xff]  ;;  %v4982_v45 = vld [vmem:[#allocation22_spill] sm:$0xff] }
 0x214   :  { %3264 = vmatprep.subr.bf16.mxu1 %v3263_v19  ;;  %2348 = vmatmul.mubr.f32.vlgmr.msra.gmra.mrb[2].mxu1 %v3898_v34  ;;  %v4981_v19 = vld [vmem:[#allocation19_spill] sm:$0xff] }
 0x215   :  { %3266 = vmatpush1.bf16.msra.mxu1 %v3265_v28  ;;  %1633 = vmatmul.mubr.f32.gmra.mrb[4].mxu0 %v4969_v9  ;;  %v4983_v28 = vld [vmem:[#allocation18_spill] sm:$0xff] }
 0x216   :  { %3268 = vmatprep.subr.bf16.mxu1 %v3267_v42  ;;  %3174 = vmatpush1.bf16.msra.mxu0 %v3173_v48  ;;  %v4984_v48 = vld [vmem:[#allocation32_spill] sm:$0xff]  ;;  %v4985_v42 = vld [vmem:[#allocation29_spill] sm:$0xff] }
 0x217   :  { %3176 = vmatprep.subr.bf16.mxu0 %v3175_v32  ;;  %2353 = vmatprep.mubr.f32.mxu1 %v4951_v43  ;;  %v4986_v32 = vld [vmem:[#allocation37_spill] sm:$0xff] }
 0x218   :  { %2355 = vmatmul.mubr.f32.gmra.mrb[4].mxu1 %v4969_v9  ;;  %1739 = vmatprep.mubr.f32.mxu0 %v4951_v43 }
 0x219   :  { %3270 = vmatpush1.bf16.msra.mxu1 %v3269_v1  ;;  %2461 = vmatprep.mubr.f32.mxu1 %v4951_v43  ;;  %v4987_v1 = vld [vmem:[#allocation28_spill] sm:$0xff] }
 0x21a   :  { %3272 = vmatprep.subr.bf16.mxu1 %v3271_v61  ;;  %3178 = vmatpush1.bf16.msra.mxu0 %v3177_v62  ;;  %v4988_v62 = vld [vmem:[#allocation38_spill] sm:$0xff]  ;;  %v4989_v61 = vld [vmem:[#allocation36_spill] sm:$0xff] }
 0x21b   :  { %3180 = vmatprep.subr.bf16.mxu0 %v3179_v50  ;;  %v4990_v50 = vld [vmem:[#allocation43_spill] sm:$0xff] }
 0x21d   :  { %3274 = vmatpush1.bf16.msra.mxu1 %v3273_v63  ;;  %v4991_v63 = vld [vmem:[#allocation35_spill] sm:$0xff] }
 0x21e   :  { %3276 = vmatprep.subr.bf16.mxu1 %v3275_v39  ;;  %3182 = vmatpush1.bf16.msra.mxu0 %v3181_v4  ;;  %v4992_v4 = vld [vmem:[#allocation40_spill] sm:$0xff]  ;;  %v4993_v39 = vld [vmem:[#allocation41_spill] sm:$0xff] }
 0x21f   :  { %1689 = vmatprep.subr.mxu0 %v4303_v40 }
 0x221   :  { %3278 = vmatpush1.bf16.msra.mxu1 %v3277_v51  ;;  %v4994_v51 = vld [vmem:[#allocation42_spill] sm:$0xff] }
 0x222   :  { %2411 = vmatprep.subr.mxu1 %v4324_v17  ;;  %1692 = vmatpush1.msra.mxu0 %v4312_v21 }
 0x223   :  { %3184 = vmatprep.subr.bf16.mxu0 %v4977_v46  ;;  %1742 = vmatmul.mubr.f32.vlgmr.msra.gmra.mrb[2].mxu0 %v4978_v6 }
 0x224   :  { %3186 = vmatpush1.bf16.msra.mxu0 %v4979_v0  ;;  %1747 = vmatprep.mubr.f32.mxu0 %v4951_v43 }
 0x225   :  { %2414 = vmatpush1.msra.mxu1 %v4306_v2  ;;  %3188 = vmatprep.subr.bf16.mxu0 %v4980_v37 }
 0x226   :  { %3280 = vmatprep.subr.bf16.mxu1 %v4981_v19  ;;  %2464 = vmatmul.mubr.f32.vlgmr.msra.gmra.mrb[2].mxu1 %v4978_v6  ;;  %v4995_v6 = vld [vmem:[#allocation39_spill] sm:$0xff] }
 0x227   :  { %3282 = vmatpush1.bf16.msra.mxu1 %v4982_v45  ;;  %1750 = vmatmul.mubr.f32.gmra.mrb[4].mxu0 %v4983_v28 }
 0x228   :  { %3284 = vmatprep.subr.bf16.mxu1 %v4984_v48  ;;  %3190 = vmatpush1.bf16.msra.mxu0 %v4985_v42 }
 0x229   :  { %3192 = vmatprep.subr.bf16.mxu0 %v4986_v32  ;;  %2469 = vmatprep.mubr.f32.mxu1 %v4951_v43 }
 0x22a   :  { %2472 = vmatmul.mubr.f32.gmra.mrb[4].mxu1 %v4983_v28  ;;  %1838 = vmatprep.mubr.f32.mxu0 %v4951_v43  ;;  %v4996_v28 = vand.u32 4294901760, %v3891_v30 }
 0x22b   :  { %3286 = vmatpush1.bf16.msra.mxu1 %v4987_v1  ;;  %2560 = vmatprep.mubr.f32.mxu1 %v4951_v43 }
 0x22c   :  { %3288 = vmatprep.subr.bf16.mxu1 %v4988_v62  ;;  %3194 = vmatpush1.bf16.msra.mxu0 %v4989_v61  ;;  %v3199_v24 = vpack.c.bf16 %v4997_v15, %v4996_v28  ;;  %v5005_v15 = vand.u32 4294901760, %v4003_v14  ;;  %v5011_v14 = vand.u32 4294901760, %v4967_v27  ;;  %v5018_v27 = vand.u32 4294901760, %v4123_v12 }
 0x22d   :  { %3196 = vmatprep.subr.bf16.mxu0 %v4990_v50  ;;  %v5025_v12 = vand.u32 4294901760, %v4976_v8  ;;  %v5032_v8 = vand.u32 4294901760, %v4224_v38  ;;  %v5037_v38 = vld [vmem:[#allocation42_spill] sm:$0xff] }
 0x22e   :  { %v3295_v28 = vpack.c.bf16 %v5005_v15, %v5004_v52 }
 0x22f   :  { %3290 = vmatpush1.bf16.msra.mxu1 %v4991_v63 }
 0x230   :  { %3292 = vmatprep.subr.bf16.mxu1 %v4992_v4  ;;  %3198 = vmatpush1.bf16.msra.mxu0 %v4993_v39  ;;  %v5001_v39 = vld [vmem:[#allocation20_spill] sm:$0xff] }
 0x231   :  { %1789 = vmatprep.subr.mxu0 %v4994_v51  ;;  %v5002_v51 = vand.u32 4294901760, %v4058_v35  ;;  %v5009_v35 = vand.u32 4294901760, %v4008_v56  ;;  %v5016_v56 = vand.u32 4294901760, %v4970_v25  ;;  %v5022_v25 = vand.u32 4294901760, %v4236_v3 }
 0x232   :  { %v5028_v3 = vand.u32 4294901760, %v4211_v5  ;;  %v5034_v5 = vand.u32 4294901760, %v4312_v21 }
 0x233   :  { %3294 = vmatpush1.bf16.msra.mxu1 %v4995_v6  ;;  %v5003_v6 = vand.u32 4294901760, %v4110_v49  ;;  %v3299_v49 = vpack.c.bf16 %v5010_v31, %v5009_v35  ;;  %v3211_v15 = vpack.c.bf16 %v5023_v41, %v5022_v25 }
 0x234   :  { %2511 = vmatprep.subr.mxu1 %v4282_v22  ;;  %1791 = vmatpush1.msra.mxu0 %v4998_v26 }
 0x235   :  { %3200 = vmatprep.subr.bf16.mxu0 %v3199_v24  ;;  %1842 = vmatmul.mubr.f32.vlgmr.msra.gmra.mrb[2].mxu0 %v5001_v39  ;;  %v3203_v30 = vpack.c.bf16 %v5003_v6, %v5002_v51  ;;  %v3297_v24 = vpack.c.bf16 %v5008_v57, %v5007_v20  ;;  %v5013_v51 = vand.u32 4294901760, %v4132_v44  ;;  %v5015_v6 = vld [vmem:[#allocation21_spill] sm:$0xff]  ;;  %v3213_v57 = vpack.c.bf16 %v5029_v55, %v5028_v3 }
 0x236   :  { %3202 = vmatpush1.bf16.msra.mxu0 %v3201_v16  ;;  %1847 = vmatprep.mubr.f32.mxu0 %v4951_v43  ;;  %v5012_v16 = vand.u32 4294901760, %v4968_v47  ;;  %v5019_v47 = vand.u32 4294901760, %v4171_v36  ;;  %v5024_v36 = vand.u32 4294901760, %v4975_v13  ;;  %v5031_v13 = vand.u32 4294901760, %v4187_v18 }
 0x237   :  { %2513 = vmatpush1.msra.mxu1 %v5006_v23  ;;  %3204 = vmatprep.subr.bf16.mxu0 %v3203_v30  ;;  %v3207_v7 = vpack.c.bf16 %v5014_v58, %v5013_v51  ;;  %v5021_v30 = vand.u32 4294901760, %v4175_v60  ;;  %v5035_v18 = vand.u32 4294901760, %v4306_v2  ;;  %v5036_v2 = vld [vmem:[#allocation41_spill] sm:$0xff] }
 0x238   :  { %3296 = vmatprep.subr.bf16.mxu1 %v3295_v28  ;;  %2564 = vmatmul.mubr.f32.vlgmr.msra.gmra.mrb[2].mxu1 %v5001_v39  ;;  %v3205_v59 = vpack.c.bf16 %v5012_v16, %v5011_v14  ;;  %v3301_v39 = vpack.c.bf16 %v5017_v54, %v5016_v56  ;;  %v3303_v44 = vpack.c.bf16 %v5019_v47, %v5018_v27  ;;  %v5027_v28 = vand.u32 4294901760, %v4241_v33 }
 0x239   :  { %3298 = vmatpush1.bf16.msra.mxu1 %v3297_v24  ;;  %1851 = vmatmul.mubr.f32.gmra.mrb[4].mxu0 %v5015_v6  ;;  %v3209_v52 = vpack.c.bf16 %v5021_v30, %v5020_v29  ;;  %v3305_v60 = vpack.c.bf16 %v5025_v12, %v5024_v36  ;;  %v5030_v24 = vand.u32 4294901760, %v4303_v40  ;;  %v3309_v35 = vpack.c.bf16 %v5032_v8, %v5031_v13 }
 0x23a   :  { %3300 = vmatprep.subr.bf16.mxu1 %v3299_v49  ;;  %3206 = vmatpush1.bf16.msra.mxu0 %v3205_v59  ;;  %v3307_v20 = vpack.c.bf16 %v5027_v28, %v5026_v53 }
 0x23b   :  { %3208 = vmatprep.subr.bf16.mxu0 %v3207_v7  ;;  %2569 = vmatprep.mubr.f32.mxu1 %v4951_v43 }
 0x23c   :  { %2573 = vmatmul.mubr.f32.gmra.mrb[4].mxu1 %v5015_v6  ;;  %1975 = vmatprep.mubr.f32.mxu0 %v4951_v43 }
 0x23d   :  { %3302 = vmatpush1.bf16.msra.mxu1 %v3301_v39  ;;  %2697 = vmatprep.mubr.f32.mxu1 %v4951_v43 }
 0x23e   :  { %3304 = vmatprep.subr.bf16.mxu1 %v3303_v44  ;;  %3210 = vmatpush1.bf16.msra.mxu0 %v3209_v52 }
 0x23f   :  { %3212 = vmatprep.subr.bf16.mxu0 %v3211_v15 }
 0x241   :  { %3306 = vmatpush1.bf16.msra.mxu1 %v3305_v60 }
 0x242   :  { %3308 = vmatprep.subr.bf16.mxu1 %v3307_v20  ;;  %3214 = vmatpush1.bf16.msra.mxu0 %v3213_v57 }
 0x243   :  { %1924 = vmatprep.subr.mxu0 %v5030_v24 }
 0x245   :  { %3310 = vmatpush1.bf16.msra.mxu1 %v3309_v35 }
 0x246   :  { %2646 = vmatprep.subr.mxu1 %v5033_v10  ;;  %1928 = vmatpush1.msra.mxu0 %v5034_v5 }
 0x247   :  { %3216 = vmatprep.subr.bf16.mxu0 %v4977_v46  ;;  %1977 = vmatmul.mubr.f32.vlgmr.msra.gmra.mrb[2].mxu0 %v3898_v34 }
 0x248   :  { %3218 = vmatpush1.bf16.msra.mxu0 %v4979_v0  ;;  %1982 = vmatprep.mubr.f32.mxu0 %v4951_v43 }
 0x249   :  { %2650 = vmatpush1.msra.mxu1 %v5035_v18  ;;  %3220 = vmatprep.subr.bf16.mxu0 %v4980_v37 }
 0x24a   :  { %3312 = vmatprep.subr.bf16.mxu1 %v4981_v19  ;;  %2699 = vmatmul.mubr.f32.vlgmr.msra.gmra.mrb[2].mxu1 %v3898_v34 }
 0x24b   :  { %3314 = vmatpush1.bf16.msra.mxu1 %v4982_v45  ;;  %1984 = vmatmul.mubr.f32.gmra.mrb[4].mxu0 %v4969_v9 }
 0x24c   :  { %3316 = vmatprep.subr.bf16.mxu1 %v4984_v48  ;;  %3222 = vmatpush1.bf16.msra.mxu0 %v4985_v42 }
 0x24d   :  { %3224 = vmatprep.subr.bf16.mxu0 %v4986_v32  ;;  %2704 = vmatprep.mubr.f32.mxu1 %v4951_v43 }
 0x24e   :  { %2706 = vmatmul.mubr.f32.gmra.mrb[4].mxu1 %v4969_v9  ;;  %2072 = vmatprep.mubr.f32.mxu0 %v4951_v43 }
 0x24f   :  { %3318 = vmatpush1.bf16.msra.mxu1 %v4987_v1  ;;  %2794 = vmatprep.mubr.f32.mxu1 %v4951_v43 }
 0x250   :  { %3320 = vmatprep.subr.bf16.mxu1 %v4988_v62  ;;  %3226 = vmatpush1.bf16.msra.mxu0 %v4989_v61 }
 0x251   :  { %3228 = vmatprep.subr.bf16.mxu0 %v4990_v50 }
 0x253   :  { %3322 = vmatpush1.bf16.msra.mxu1 %v4991_v63 }
 0x254   :  { %3324 = vmatprep.subr.bf16.mxu1 %v4992_v4  ;;  %3230 = vmatpush1.bf16.msra.mxu0 %v5036_v2 }
 0x255   :  { %2023 = vmatprep.subr.mxu0 %v5037_v38 }
 0x257   :  { %3326 = vmatpush1.bf16.msra.mxu1 %v5038_v11 }
 0x258   :  { %2745 = vmatprep.subr.mxu1 %v4282_v22  ;;  %2025 = vmatpush1.msra.mxu0 %v4998_v26 }
 0x259   :  { %2074 = vmatmul.mubr.f32.vlgmr.msra.gmra.mrb[2].mxu0 %v3898_v34 }
 0x25a   :  { %2079 = vmatprep.mubr.f32.mxu0 %v4951_v43 }
 0x25b   :  { %2747 = vmatpush1.msra.mxu1 %v5006_v23 }
 0x25c   :  { %2796 = vmatmul.mubr.f32.vlgmr.msra.gmra.mrb[2].mxu1 %v3898_v34 }
 0x25d   :  { %2081 = vmatmul.mubr.f32.gmra.mrb[4].mxu0 %v4969_v9  ;;  %2801 = vmatprep.mubr.f32.mxu1 %v4951_v43 }
 0x260   :  { %2803 = vmatmul.mubr.f32.gmra.mrb[4].mxu1 %v4969_v9 }
 0x28d   :  { %v1351_v33 = vpop.permute.xlu1 %1350 }
 0x28e   :  { %v1356_v17 = vpop.permute.xlu0 %1355 }
 0x32c   :  { %v2075_v21 = vpop.f32.mrb[2].mxu0 }
 0x32d   :  { %v3331_v40 = vadd.f32 %v2075_v21, %v1351_v33  ;;  %v2077_v22 = vpop.f32.mrb[3].mxu0 }
 0x32e   :  { %v3332_v62 = vadd.f32 %v2077_v22, %v1351_v33 }
 0x32f   :  { %v4604_v26 = vmax.f32 %v3331_v40, 0.0  ;;  %v2797_v46 = vpop.f32.mrb[2].mxu1 }
 0x330   :  { %v3335_v0 = vadd.f32 %v2797_v46, %v1351_v33  ;;  %v2799_v37 = vpop.f32.mrb[3].mxu1  ;;  %v2082_v19 = vpop.f32.mrb[4].mxu0  ;;  %v2810_v61 = vmax.f32 %v3332_v62, 0.0 }
 0x331   :  { %v3333_v45 = vadd.f32 %v2082_v19, %v1356_v17  ;;  %v2084_v48 = vpop.f32.mrb[5].mxu0  ;;  %2817 = vrot.lane.b32.xlu1 %v4604_v26, %s3507_s21  ;;  %v3336_v4 = vadd.f32 %v2799_v37, %v1351_v33 }
 0x332   :  { %v4608_v34 = vmax.f32 %v3335_v0, 0.0  ;;  %v3334_v50 = vadd.f32 %v2084_v48, %v1356_v17 }
 0x333   :  { %v4610_v43 = vmax.f32 %v3333_v45, 0.0  ;;  %v2804_v9 = vpop.f32.mrb[4].mxu1  ;;  %v4645_v23 = vmax.f32 %v3336_v4, 0.0 }
 0x334   :  { %v3337_v42 = vadd.f32 %v2804_v9, %v1356_v17  ;;  %v2806_v32 = vpop.f32.mrb[5].mxu1  ;;  %2825 = vrot.lane.b32.xlu0 %v4608_v34, %s3507_s21  ;;  %v4637_v63 = vmax.f32 %v3334_v50, 0.0 }
 0x335   :  { %2819 = vrot.lane.b32.xlu1 %v4610_v43, %s3507_s21  ;;  %v3338_v31 = vadd.f32 %v2806_v32, %v1356_v17  ;;  %v2913_v17 = vld [vmem:[#allocation6] sm:$0xff] }
 0x336   :  { %v4616_v1 = vmax.f32 %v3337_v42, 0.0 }
 0x337   :  { %v4651_v49 = vmax.f32 %v3338_v31, 0.0 }
 0x338   :  { %2849 = vrot.lane.b32.xlu0 %v4604_v26, %s3508_s22 }
 0x339   :  { %2827 = vrot.lane.b32.xlu1 %v4616_v1, %s3507_s21 }
 0x33c   :  { %2857 = vrot.lane.b32.xlu0 %v4608_v34, %s3508_s22 }
 0x33d   :  { %2851 = vrot.lane.b32.xlu1 %v4610_v43, %s3508_s22 }
 0x340   :  { %2873 = vrot.lane.b32.xlu0 %v4604_v26, %s3509_s23 }
 0x341   :  { %2859 = vrot.lane.b32.xlu1 %v4616_v1, %s3508_s22 }
 0x344   :  { %2881 = vrot.lane.b32.xlu0 %v4608_v34, %s3509_s23 }
 0x345   :  { %2875 = vrot.lane.b32.xlu1 %v4610_v43, %s3509_s23 }
 0x348   :  { %2821 = vrot.lane.b32.xlu0 %v2810_v61, %s3507_s21 }
 0x349   :  { %2883 = vrot.lane.b32.xlu1 %v4616_v1, %s3509_s23 }
 0x34c   :  { %2853 = vrot.lane.b32.xlu0 %v2810_v61, %s3508_s22 }
 0x34d   :  { %2823 = vrot.lane.b32.xlu1 %v4637_v63, %s3507_s21 }
 0x350   :  { %2877 = vrot.lane.b32.xlu0 %v2810_v61, %s3509_s23 }
 0x351   :  { %2855 = vrot.lane.b32.xlu1 %v4637_v63, %s3508_s22 }
 0x354   :  { %2829 = vrot.lane.b32.xlu0 %v4645_v23, %s3507_s21 }
 0x355   :  { %2879 = vrot.lane.b32.xlu1 %v4637_v63, %s3509_s23 }
 0x358   :  { %2861 = vrot.lane.b32.xlu0 %v4645_v23, %s3508_s22 }
 0x359   :  { %2831 = vrot.lane.b32.xlu1 %v4651_v49, %s3507_s21 }
 0x35c   :  { %2885 = vrot.lane.b32.xlu0 %v4645_v23, %s3509_s23 }
 0x35d   :  { %2863 = vrot.lane.b32.xlu1 %v4651_v49, %s3508_s22 }
 0x361   :  { %2887 = vrot.lane.b32.xlu1 %v4651_v49, %s3509_s23 }
 0x3a3   :  { %v2818_v14 = vpop.permute.xlu1 %2817 }
 0x3a6   :  { %v2826_v16 = vpop.permute.xlu0 %2825 }
 0x3a7   :  { %v4663_v59 = vpop.permute.xlu1 %2819 }
 0x3aa   :  { %v2850_v51 = vpop.permute.xlu0 %2849 }
 0x3ab   :  { %v2828_v58 = vpop.permute.xlu1 %2827 }
 0x3ae   :  { %v2858_v7 = vpop.permute.xlu0 %2857 }
 0x3af   :  { %v4665_v6 = vpop.permute.xlu1 %2851 }
 0x3b2   :  { %v2874_v56 = vpop.permute.xlu0 %2873 }
 0x3b3   :  { %v4667_v54 = vpop.permute.xlu1 %2859 }
 0x3b6   :  { %v2882_v39 = vpop.permute.xlu0 %2881 }
 0x3b7   :  { %v4669_v27 = vpop.permute.xlu1 %2875 }
 0x3ba   :  { %v2822_v47 = vpop.permute.xlu0 %2821 }
 0x3bb   :  { %v4671_v44 = vpop.permute.xlu1 %2883  ;;  %v2835_v12 = vsel %vm1180_vm2, %v2822_v47, %v2826_v16  ;;  %v2837_v60 = vsel %vm1180_vm2, %v2818_v14, %v2822_v47  ;;  %v2917_v47 = vld [vmem:[#allocation6 + $0x20] sm:$0xff] }
 0x3bc   :  { %v2841_v24 = vmax.f32 %v4604_v26, %v2837_v60  ;;  %v2842_v13 = vmax.f32 %v2810_v61, %v2835_v12  ;;  %v2914_v26 = vld [vmem:[#allocation6 + $0x8] sm:$0xff] }
 0x3be   :  { %v2854_v29 = vpop.permute.xlu0 %2853 }
 0x3bf   :  { %v2824_v30 = vpop.permute.xlu1 %2823  ;;  %v2867_v53 = vsel %vm1214_vm4, %v2854_v29, %v2858_v7  ;;  %v2869_v28 = vsel %vm1214_vm4, %v2850_v51, %v2854_v29  ;;  %v2918_v29 = vld [vmem:[#allocation6 + $0x28] sm:$0xff] }
 0x3c0   :  { %v2836_v10 = vsel %vm1180_vm2, %v2824_v30, %v2828_v58  ;;  %v2838_v5 = vsel %vm1180_vm2, %v4663_v59, %v2824_v30 }
 0x3c1   :  { %v2845_v46 = vmax.f32 %v4610_v43, %v2838_v5  ;;  %v2846_v0 = vmax.f32 %v4637_v63, %v2836_v10 }
 0x3c2   :  { %v2878_v52 = vpop.permute.xlu0 %2877 }
 0x3c3   :  { %v2891_v41 = vsel %vm1231_vm5, %v2878_v52, %v2882_v39  ;;  %v2893_v15 = vsel %vm1231_vm5, %v2874_v56, %v2878_v52  ;;  %v2856_v36 = vpop.permute.xlu1 %2855 }
 0x3c4   :  { %v2897_v20 = vmax.f32 %v2869_v28, %v2893_v15  ;;  %v2898_v3 = vmax.f32 %v2867_v53, %v2891_v41  ;;  %v2868_v18 = vsel %vm1214_vm4, %v2856_v36, %v4667_v54  ;;  %v2870_v2 = vsel %vm1214_vm4, %v4665_v6, %v2856_v36  ;;  %v2916_v15 = vld [vmem:[#allocation6 + $0x18] sm:$0xff] }
 0x3c6   :  { %v2830_v55 = vpop.permute.xlu0 %2829  ;;  %v4703_v38 = vmax.f32 %v2841_v24, %v2897_v20  ;;  %v4705_v11 = vmax.f32 %v2842_v13, %v2898_v3 }
 0x3c7   :  { %v2880_v57 = vpop.permute.xlu1 %2879  ;;  %v2833_v37 = vsel %vm1180_vm2, %v2826_v16, %v2830_v55  ;;  %v2839_v19 = vsel %vm1180_vm2, %v2830_v55, %v2818_v14 }
 0x3c8   :  { %v2892_v8 = vsel %vm1231_vm5, %v2880_v57, %v4671_v44  ;;  %v2894_v35 = vsel %vm1231_vm5, %v4669_v27, %v2880_v57  ;;  %v2921_v42 = vmul.f32 %v2913_v17, %v4703_v38  ;;  %v2922_v32 = vmul.f32 %v2914_v26, %v4705_v11 }
 0x3c9   :  { %v2901_v33 = vmax.f32 %v2870_v2, %v2894_v35  ;;  %v2902_v21 = vmax.f32 %v2868_v18, %v2892_v8  ;;  %v2843_v4 = vmax.f32 %v4608_v34, %v2833_v37  ;;  %v2844_v31 = vmax.f32 %v4645_v23, %v2839_v19  ;;  %v2919_v8 = vld [vmem:[#allocation6 + $0x30] sm:$0xff] }
 0x3ca   :  { %v2862_v40 = vpop.permute.xlu0 %2861  ;;  %v2939_v34 = vmul.f32 %v2921_v42, %v4703_v38  ;;  %v2940_v23 = vmul.f32 %v2922_v32, %v4705_v11  ;;  %v3515_v19 = vmov 2  }
 0x3cb   :  { %v2832_v22 = vpop.permute.xlu1 %2831  ;;  %v4713_v45 = vmax.f32 %v2845_v46, %v2901_v33  ;;  %v4715_v48 = vmax.f32 %v2846_v0, %v2902_v21  ;;  %v2865_v43 = vsel %vm1214_vm4, %v2858_v7, %v2862_v40  ;;  %v2871_v62 = vsel %vm1214_vm4, %v2862_v40, %v2850_v51  ;;  %3420 = vset.pattern.permute.xlu1 %v3515_v19 }
 0x3cc   :  { %v2834_v7 = vsel %vm1180_vm2, %v2828_v58, %v2832_v22  ;;  %v2840_v51 = vsel %vm1180_vm2, %v2832_v22, %v4663_v59  ;;  %v2929_v58 = vadd.f32 %v2922_v32, %v2921_v42  ;;  %v2947_v13 = vadd.f32 %v2940_v23, %v2939_v34  ;;  %3421 = vset.pattern.permute.xlu0 %v3515_v19  ;;  %v5041_v23 = vld [vmem:[#allocation23_spill] sm:$0xff] }
 0x3cd   :  { %v2925_v36 = vmul.f32 %v2917_v47, %v4713_v45  ;;  %v2926_v59 = vmul.f32 %v2918_v29, %v4715_v48  ;;  %v2847_v28 = vmax.f32 %v4616_v1, %v2834_v7  ;;  %v2848_v20 = vmax.f32 %v4651_v49, %v2840_v51  ;;  %v5040_v51 = vld [vmem:[#allocation13_spill] sm:$0xff] }
 0x3ce   :  { %v2886_v9 = vpop.permute.xlu0 %2885 }
 0x3cf   :  { %v2889_v61 = vsel %vm1231_vm5, %v2882_v39, %v2886_v9  ;;  %v2895_v50 = vsel %vm1231_vm5, %v2886_v9, %v2874_v56  ;;  %v2864_v63 = vpop.permute.xlu1 %2863  ;;  %v2915_v39 = vld [vmem:[#allocation6 + $0x10] sm:$0xff]  ;;  %v2944_v1 = vmul.f32 %v2926_v59, %v4715_v48  ;;  %v2934_v2 = vadd.f32 %v2926_v59, %v2925_v36 }
 0x3d0   :  { %v2899_v14 = vmax.f32 %v2865_v43, %v2889_v61  ;;  %v2900_v16 = vmax.f32 %v2871_v62, %v2895_v50  ;;  %v2866_v52 = vsel %vm1214_vm4, %v4667_v54, %v2864_v63  ;;  %v2872_v12 = vsel %vm1214_vm4, %v2864_v63, %v4665_v6 }
 0x3d2   :  { %v4734_v30 = vmax.f32 %v2843_v4, %v2899_v14  ;;  %v4736_v56 = vmax.f32 %v2844_v31, %v2900_v16 }
 0x3d3   :  { %v2888_v41 = vpop.permute.xlu1 %2887 }
 0x3d4   :  { %v2890_v60 = vsel %vm1231_vm5, %v4671_v44, %v2888_v41  ;;  %v2896_v53 = vsel %vm1231_vm5, %v2888_v41, %v4669_v27  ;;  %v2923_v54 = vmul.f32 %v2915_v39, %v4734_v30  ;;  %v2924_v57 = vmul.f32 %v2916_v15, %v4736_v56  ;;  %v2920_v44 = vld [vmem:[#allocation6 + $0x38] sm:$0xff] }
 0x3d5   :  { %v2903_v3 = vmax.f32 %v2866_v52, %v2890_v60  ;;  %v2904_v55 = vmax.f32 %v2872_v12, %v2896_v53  ;;  %v2943_v27 = vmul.f32 %v2925_v36, %v4713_v45  ;;  %v3516_v41 = vmov 3  }
 0x3d6   :  { %v2930_v24 = vadd.f32 %v2929_v58, %v2923_v54  ;;  %v2941_v6 = vmul.f32 %v2923_v54, %v4734_v30  ;;  %v2942_v33 = vmul.f32 %v2924_v57, %v4736_v56 }
 0x3d7   :  { %v4759_v35 = vmax.f32 %v2847_v28, %v2903_v3  ;;  %v4761_v25 = vmax.f32 %v2848_v20, %v2904_v55  ;;  %v2952_v22 = vadd.f32 %v2944_v1, %v2943_v27 }
 0x3d8   :  { %v2931_v10 = vadd.f32 %v2930_v24, %v2924_v57  ;;  %v2948_v49 = vadd.f32 %v2947_v13, %v2941_v6 }
 0x3d9   :  { %v2927_v5 = vmul.f32 %v2919_v8, %v4759_v35  ;;  %v2928_v18 = vmul.f32 %v2920_v44, %v4761_v25 }
 0x3da   :  { %2932 = vadd.xlane.f32.xlu0 %v2931_v10  ;;  %v2949_v17 = vadd.f32 %v2948_v49, %v2942_v33 }
 0x3db   :  { %v2935_v21 = vadd.f32 %v2934_v2, %v2927_v5  ;;  %v2945_v40 = vmul.f32 %v2927_v5, %v4759_v35  ;;  %v2946_v46 = vmul.f32 %v2928_v18, %v4761_v25 }
 0x3dd   :  { %v2936_v26 = vadd.f32 %v2935_v21, %v2928_v18  ;;  %v2953_v0 = vadd.f32 %v2952_v22, %v2945_v40 }
 0x3de   :  { %2950 = vadd.xlane.f32.xlu0 %v2949_v17 }
 0x3df   :  { %2937 = vadd.xlane.f32.xlu1 %v2936_v26  ;;  %v2954_v37 = vadd.f32 %v2953_v0, %v2946_v46 }
 0x3e2   :  { %2955 = vadd.xlane.f32.xlu0 %v2954_v37 }
 0x467   :  { %v2933_v9 = vpop.xlane.xlu0 %2932 }
 0x468   :  { %v2957_v42 = vmul.f32 0.013888889, %v2933_v9 }
 0x46a   :  { %v2961_v43 = vmul.f32 %v2957_v42, %v2957_v42  ;;  %v2969_v58 = vsub.f32 %v4703_v38, %v2957_v42  ;;  %v2970_v36 = vsub.f32 %v4705_v11, %v2957_v42  ;;  %v2971_v59 = vsub.f32 %v4734_v30, %v2957_v42 }
 0x46b   :  { %v2951_v32 = vpop.xlane.xlu0 %2950  ;;  %v2972_v12 = vsub.f32 %v4736_v56, %v2957_v42 }
 0x46c   :  { %v2959_v62 = vmul.f32 0.013888889, %v2951_v32  ;;  %v2938_v61 = vpop.xlane.xlu1 %2937 }
 0x46d   :  { %v2958_v50 = vmul.f32 0.013888889, %v2938_v61 }
 0x46e   :  { %v2963_v63 = vsub.f32 %v2959_v62, %v2961_v43 }
 0x46f   :  { %v2956_v4 = vpop.xlane.xlu0 %2955  ;;  %v2962_v31 = vmul.f32 %v2958_v50, %v2958_v50  ;;  %v2973_v20 = vsub.f32 %v4713_v45, %v2958_v50  ;;  %v2974_v3 = vsub.f32 %v4715_v48, %v2958_v50  ;;  %v2975_v55 = vsub.f32 %v4759_v35, %v2958_v50 }
 0x470   :  { %v2965_v14 = vadd.f32 1e-05, %v2963_v63  ;;  %v2960_v16 = vmul.f32 0.013888889, %v2956_v4  ;;  %v2976_v57 = vsub.f32 %v4761_v25, %v2958_v50 }
 0x472   :  { %3424 = vrsqrt.f32 %v2965_v14  ;;  %v2964_v47 = vsub.f32 %v2960_v16, %v2962_v31 }
 0x474   :  { %v2966_v29 = vadd.f32 1e-05, %v2964_v47 }
 0x476   :  { %3426 = vrsqrt.f32 %v2966_v29 }
 0x47c   :  { %v3425_v7 = vpop.eup %3424 }
 0x47d   :  { %v2977_v39 = vmul.f32 %v3425_v7, %v5040_v51 }
 0x47f   :  { %2981 = vperm.xlu1 %3420, %v2977_v39  }
 0x480   :  { %v3427_v34 = vpop.eup %3426 }
 0x481   :  { %v2978_v52 = vmul.f32 %v3427_v34, %v5041_v23 }
 0x483   :  { %3422 = vset.pattern.permute.xlu1 %v3516_v41  ;;  %2986 = vperm.xlu0 %3421, %v2978_v52  }
 0x484   :  { %2998 = vperm.xlu1 %3422, %v5040_v51  }
 0x487   :  { %3423 = vset.pattern.permute.xlu0 %v3516_v41 }
 0x488   :  { %3002 = vperm.xlu1 %3422, %v5041_v23  }
 0x4fe   :  { %v2982_v15 = vpop.permute.xlu1 %2981 }
 0x4ff   :  { %v2989_v60 = vmul.f32 %v2982_v15, %v2969_v58  ;;  %v2990_v53 = vmul.f32 %v2982_v15, %v2970_v36  ;;  %v2991_v54 = vmul.f32 %v2982_v15, %v2971_v59  ;;  %v2992_v28 = vmul.f32 %v2982_v15, %v2972_v12 }
 0x502   :  { %v2987_v24 = vpop.permute.xlu0 %2986 }
 0x503   :  { %v2999_v38 = vpop.permute.xlu1 %2998  ;;  %v2993_v56 = vmul.f32 %v2987_v24, %v2973_v20  ;;  %v2994_v8 = vmul.f32 %v2987_v24, %v2974_v3  ;;  %v2995_v44 = vmul.f32 %v2987_v24, %v2975_v55  ;;  %v2996_v27 = vmul.f32 %v2987_v24, %v2976_v57 }
 0x504   :  { %v3005_v6 = vadd.f32 %v2999_v38, %v2989_v60  ;;  %v3006_v11 = vadd.f32 %v2999_v38, %v2990_v53  ;;  %v3007_v13 = vadd.f32 %v2999_v38, %v2991_v54  ;;  %v3008_v30 = vadd.f32 %v2999_v38, %v2992_v28 }
 0x506   :  { %3013 = vst [vmem:[#allocation8] sm:$0xff] %v3005_v6  ;;  %3014 = vst [vmem:[#allocation8 + $0x8] sm:$0xff] %v3006_v11 }
 0x507   :  { %3015 = vst [vmem:[#allocation8 + $0x10] sm:$0xff] %v3007_v13  ;;  %3016 = vst [vmem:[#allocation8 + $0x18] sm:$0xff] %v3008_v30  ;;  %v3003_v45 = vpop.permute.xlu1 %3002 }
 0x508   :  { %v3009_v48 = vadd.f32 %v3003_v45, %v2993_v56  ;;  %v3010_v35 = vadd.f32 %v3003_v45, %v2994_v8  ;;  %v3011_v25 = vadd.f32 %v3003_v45, %v2995_v44  ;;  %v3012_v1 = vadd.f32 %v3003_v45, %v2996_v27 }
 0x50a   :  { %3017 = vst [vmem:[#allocation8 + $0x20] sm:$0xff] %v3009_v48  ;;  %3018 = vst [vmem:[#allocation8 + $0x28] sm:$0xff] %v3010_v35 }
 0x50b   :  { %3019 = vst [vmem:[#allocation8 + $0x30] sm:$0xff] %v3011_v25  ;;  %3020 = vst [vmem:[#allocation8 + $0x38] sm:$0xff] %v3012_v1 }
 0x50c   :  { %3483 = shalt.err (!%p3480_p6)
}
 0x50d   :  { %s3484_s16 = scalar_lea.hbm %s4802_s5, 1024 }
 0x50e   :  { %p3485_p7 = scmp.ne.s32.totalorder %s4802_s5, %s3484_s16  ;;  %p3488_p8 = scmp.lt.u32.totalorder %s3484_s16, %s4802_s5 }
 0x510   :  { %p3490_p9 = pnand %p3488_p8, %p3485_p7 }
 0x512   :  { %3493 = shalt.err (!%p3490_p9)
}
 0x513   :  { %3032 = dma.vmem_to_hbm [thread:$0]  %s3027_s12, 1024, %s4802_s5, [#allocation5], %s3501_s28, %s3501_s28, %s3502_s29  }
 0x514   :  { %3498 = dma.done.wait [#allocation5], 1024  }
 0x515   :  { %3499 = vsyncadd [#allocation5], 4294966272 }
 0x516   :  { %3036 = vsyncpa [#allocation4], 1 }
 0x517   :  { %3037 = vsyncpa [#allocation7], 1 }
 0x518   :  { %3038 = vsyncpa [#allocation5], 1 }

</bundles_post_ra>
